<compile_context>
chip_gen: v6e
topology: v6e:2x2x1
jax: 0.10.0
libtpu: 0.0.40
codegen_flags: <defaults>
</compile_context>

<pallas_src>
import functools
import math

import jax
import jax.numpy as jnp
from jax import lax
from jax.experimental import pallas as pl
from jax.experimental.pallas import tpu as pltpu


# ----------------------------- in-kernel helpers -----------------------------

def _layernorm(x, g, b, eps=1e-12):
    mu = jnp.mean(x, axis=-1, keepdims=True)
    var = jnp.mean((x - mu) ** 2, axis=-1, keepdims=True)
    return (x - mu) * lax.rsqrt(var + eps) * g + b


def _gelu(h):
    # TODO(synk): HF BERT uses exact erf-GELU; tanh approximation used here
    #             (matches to ~1e-3 and lowers cleanly on the VPU/EUP).
    return 0.5 * h * (1.0 + jnp.tanh(0.7978845608028654 * (h + 0.044715 * h * h * h)))


# --------------------------- fused per-sequence kernel ------------------------

def _bert_seq_kernel(emb_ref, mask_ref, eg_ref, eb_ref,
                     wqkv_ref, bqkv_ref, wo_ref, bo_ref,
                     ln1g_ref, ln1b_ref, w1_ref, b1_ref,
                     w2_ref, b2_ref, ln2g_ref, ln2b_ref,
                     fcw_ref, fcb_ref,
                     out_ref,
                     *, num_layers, num_heads, seq, hidden):
    H, NH, S = hidden, num_heads, seq
    Dh = H // NH
    scale = 1.0 / math.sqrt(Dh)

    # Embedding LayerNorm for this sequence.  (S, H)
    x = _layernorm(emb_ref[0].astype(jnp.float32), eg_ref[...], eb_ref[...])

    # Additive attention mask, read ONCE and reused by every layer/head.
    mask_add = mask_ref[0]                                   # (1, S)

    # L == 2: static unroll is intentional (== lax.fori_loop(..., unroll=True));
    # at larger depth switch to a layer grid axis + per-layer weight BlockSpecs
    # so the all-resident weight stack stays within v7x's 64 MiB VMEM.
    for l in range(num_layers):
        # ---- Q/K/V for ALL heads in one batched matmul (no sub-lane slicing).
        # wqkv_ref[l]: (3*NH, H, Dh), head-major repack done in the wrapper.
        xb = jnp.broadcast_to(x[None], (3 * NH, S, H))
        qkv = jnp.einsum("nsh,nhd->nsd", xb, wqkv_ref[l],
                         preferred_element_type=jnp.float32) + bqkv_ref[l]
        q = qkv[:NH]                                         # (NH, S, Dh)
        k = qkv[NH:2 * NH]
        v = qkv[2 * NH:]

        # ---- attention scores / softmax, batched over heads.
        s = jnp.einsum("nqd,nkd->nqk", q, k,
                       preferred_element_type=jnp.float32) * scale
        s = s + mask_add                                     # broadcast over heads/rows
        s = s - jnp.max(s, axis=-1, keepdims=True)           # stable softmax
        p = jnp.exp(s)
        p = p * pl.reciprocal(jnp.sum(p, axis=-1, keepdims=True), approx=True)
        ctx = jnp.einsum("nqk,nkd->nqd", p, v,
                         preferred_element_type=jnp.float32)  # (NH, S, Dh)

        # ---- output projection: head-batched matmul + sum over heads
        #      (mathematically identical to concat-heads @ Wo).
        attn = jnp.sum(jnp.einsum("nsd,ndh->nsh", ctx, wo_ref[l],
                                  preferred_element_type=jnp.float32),
                       axis=0) + bo_ref[l]
        x = _layernorm(attn + x, ln1g_ref[l], ln1b_ref[l])

        # ---- feed-forward (GELU) + residual LayerNorm.
        h1 = jnp.dot(x, w1_ref[l], preferred_element_type=jnp.float32) + b1_ref[l]
        ffn = (jnp.dot(_gelu(h1), w2_ref[l], preferred_element_type=jnp.float32)
               + b2_ref[l])
        x = _layernorm(ffn + x, ln2g_ref[l], ln2b_ref[l])

    # ---- classifier on the CLS token: one dot, one full-block store.
    # (O=4 lanes -> masked store; pad to 128 lanes only if batch gets large.)
    cls = x[0:1, :]                                          # (1, H)
    logits = jnp.dot(cls, fcw_ref[...],
                     preferred_element_type=jnp.float32) + fcb_ref[...]
    out_ref[...] = logits.reshape(1, 1, -1).astype(out_ref.dtype)


# ------------------------------- model wrapper --------------------------------

CFG = dict(
    vocab=100,
    max_pos=16,
    type_vocab=2,
    hidden=32,
    heads=4,
    layers=2,
    intermediate=64,
    output_size=4,
    drop_rate=0.1,   # eval-mode dropout is identity
)


def init_params(key, cfg):
    H, I, L, O = cfg["hidden"], cfg["intermediate"], cfg["layers"], cfg["output_size"]

    def dense(k, fi, fo):
        kw, kb = jax.random.split(k)
        return (0.02 * jax.random.normal(kw, (fi, fo), jnp.float32),
                0.02 * jax.random.normal(kb, (1, fo), jnp.float32))

    keys = iter(jax.random.split(key, 4 + 6 * L))
    p = {
        "word_emb": 0.02 * jax.random.normal(next(keys), (cfg["vocab"], H), jnp.float32),
        "pos_emb": 0.02 * jax.random.normal(next(keys), (cfg["max_pos"], H), jnp.float32),
        "type_emb": 0.02 * jax.random.normal(next(keys), (cfg["type_vocab"], H), jnp.float32),
        "emb_ln_g": jnp.ones((1, H), jnp.float32),
        "emb_ln_b": jnp.zeros((1, H), jnp.float32),
    }

    stacks = {n: [] for n in
              ("wq", "bq", "wk", "bk", "wv", "bv", "wo", "bo", "w1", "b1", "w2", "b2")}
    layout = (("wq", "bq", H, H), ("wk", "bk", H, H), ("wv", "bv", H, H),
              ("wo", "bo", H, H), ("w1", "b1", H, I), ("w2", "b2", I, H))
    for _ in range(L):
        for wn, bn, fi, fo in layout:
            w_, b_ = dense(next(keys), fi, fo)
            stacks[wn].append(w_)
            stacks[bn].append(b_)
    p.update({n: jnp.stack(v) for n, v in stacks.items()})
    p.update(
        ln1_g=jnp.ones((L, 1, H), jnp.float32), ln1_b=jnp.zeros((L, 1, H), jnp.float32),
        ln2_g=jnp.ones((L, 1, H), jnp.float32), ln2_b=jnp.zeros((L, 1, H), jnp.float32),
    )
    p["fc_w"], p["fc_b"] = dense(next(keys), H, O)
    return p


def bert_class_forward(params, cfg, ids, mask, uids=None, mlp_feature=None, mode=None):
    """Equivalent of BERTClass.forward.  uids / mlp_feature / mode are unused
    (the product/concat branch in the reference module is dead code)."""
    B, S = ids.shape
    H, L, NH = cfg["hidden"], cfg["layers"], cfg["heads"]
    I, O = cfg["intermediate"], cfg["output_size"]
    Dh = H // NH

    # Embedding lookups (gathers are XLA glue; everything downstream is one
    # fused VMEM-resident Pallas kernel per sequence).
    tok = params["word_emb"][ids]                        # (B, S, H)
    pos = params["pos_emb"][:S][None, :, :]              # (1, S, H)
    typ = params["type_emb"][0][None, None, :]           # token_type_ids == 0
    emb = (tok + pos + typ).astype(jnp.float32)          # (B, S, H)

    # Additive attention mask, same as HF: (1 - mask) * -10000, shaped (B,1,S).
    mask_add = ((1.0 - mask.astype(jnp.float32)) * -10000.0)[:, None, :]

    # ---- head-major weight repack (one-time XLA glue): lets the kernel run
    #      Q/K/V for all heads as ONE batched dot_general, no sub-lane slices.
    def to_heads_w(w):       # (L, H, H) -> (L, NH, H, Dh)
        return w.reshape(L, H, NH, Dh).transpose(0, 2, 1, 3)

    def to_heads_b(b):       # (L, 1, H) -> (L, NH, 1, Dh)
        return b.reshape(L, NH, Dh)[:, :, None, :]

    wqkv = jnp.concatenate([to_heads_w(params["wq"]),
                            to_heads_w(params["wk"]),
                            to_heads_w(params["wv"])], axis=1)   # (L, 3NH, H, Dh)
    bqkv = jnp.concatenate([to_heads_b(params["bq"]),
                            to_heads_b(params["bk"]),
                            to_heads_b(params["bv"])], axis=1)   # (L, 3NH, 1, Dh)
    wo_h = params["wo"].reshape(L, NH, Dh, H)                    # (L, NH, Dh, H)

    kernel = functools.partial(_bert_seq_kernel,
                               num_layers=L, num_heads=NH, seq=S, hidden=H)

    def full(shape):  # whole-array block, constant index -> stays VMEM-resident
        return pl.BlockSpec(shape, lambda b, _n=len(shape): (0,) * _n)

    out = pl.pallas_call(
        kernel,
        out_shape=jax.ShapeDtypeStruct((B, 1, O), jnp.float32),
        grid_spec=pltpu.PrefetchScalarGridSpec(
            num_scalar_prefetch=0,
            grid=(B,),
            in_specs=[
                pl.BlockSpec((1, S, H), lambda b: (b, 0, 0)),    # emb (per sequence)
                pl.BlockSpec((1, 1, S), lambda b: (b, 0, 0)),    # additive mask
                full((1, H)), full((1, H)),                      # emb LN
                full((L, 3 * NH, H, Dh)), full((L, 3 * NH, 1, Dh)),
                full((L, NH, Dh, H)), full((L, 1, H)),
                full((L, 1, H)), full((L, 1, H)),
                full((L, H, I)), full((L, 1, I)),
                full((L, I, H)), full((L, 1, H)),
                full((L, 1, H)), full((L, 1, H)),
                full((H, O)), full((1, O)),
            ],
            out_specs=pl.BlockSpec((1, 1, O), lambda b: (b, 0, 0)),
        ),
        compiler_params=pltpu.CompilerParams(
            dimension_semantics=("parallel",)),   # batch grid -> both TCs on v7x
    )(emb, mask_add,
      params["emb_ln_g"], params["emb_ln_b"],
      wqkv, bqkv, wo_h, params["bo"],
      params["ln1_g"], params["ln1_b"], params["w1"], params["b1"],
      params["w2"], params["b2"], params["ln2_g"], params["ln2_b"],
      params["fc_w"], params["fc_b"])

    return out.reshape(B, O)


# --------------------------- pure-JAX reference (check) ------------------------

def bert_class_reference(params, cfg, ids, mask):
    B, S = ids.shape
    H, L, NH = cfg["hidden"], cfg["layers"], cfg["heads"]
    Dh = H // NH

    def ln(x, g, b, eps=1e-12):
        mu = x.mean(-1, keepdims=True)
        var = ((x - mu) ** 2).mean(-1, keepdims=True)
        return (x - mu) / jnp.sqrt(var + eps) * g + b

    x = (params["word_emb"][ids] + params["pos_emb"][:S][None]
         + params["type_emb"][0][None, None])
    x = ln(x, params["emb_ln_g"], params["emb_ln_b"])
    mask_add = ((1.0 - mask.astype(jnp.float32)) * -10000.0)[:, None, None, :]

    for l in range(L):
        q = x @ params["wq"][l] + params["bq"][l]
        k = x @ params["wk"][l] + params["bk"][l]
        v = x @ params["wv"][l] + params["bv"][l]
        split = lambda t: t.reshape(B, S, NH, Dh).transpose(0, 2, 1, 3)
        qh, kh, vh = split(q), split(k), split(v)
        s = jnp.einsum("bnqd,bnkd->bnqk", qh, kh) / math.sqrt(Dh) + mask_add
        p = jax.nn.softmax(s, axis=-1)
        ctx = jnp.einsum("bnqk,bnkd->bnqd", p, vh).transpose(0, 2, 1, 3).reshape(B, S, H)
        attn = ctx @ params["wo"][l] + params["bo"][l]
        x = ln(attn + x, params["ln1_g"][l], params["ln1_b"][l])
        h1 = x @ params["w1"][l] + params["b1"][l]
        g = 0.5 * h1 * (1.0 + jnp.tanh(0.7978845608028654 * (h1 + 0.044715 * h1 ** 3)))
        ffn = g @ params["w2"][l] + params["b2"][l]
        x = ln(ffn + x, params["ln2_g"][l], params["ln2_b"][l])

    return x[:, 0] @ params["fc_w"] + params["fc_b"]


# ---------------------------------- main ------------------------------------

if __name__ == "__main__":
    key = jax.random.PRNGKey(0)
    pkey, ikey = jax.random.split(key)

    params = init_params(pkey, CFG)

    B, S = 2, 8
    ids = jax.random.randint(ikey, (B, S), 0, CFG["vocab"], dtype=jnp.int32)
    mask = jnp.ones((B, S), jnp.int32).at[1, 6:].set(0)       # pad last tokens of row 1
    uids = jnp.ones((B, 1), jnp.int32)                        # unused (dead code path)
    mlp_feature = jnp.zeros((4, CFG["hidden"]), jnp.float32)  # unused (dead code path)

    out = bert_class_forward(params, CFG, ids, mask, uids, mlp_feature, mode=None)
    out = jax.block_until_ready(out)

    ref = bert_class_reference(params, CFG, ids, mask)
    assert out.shape == (B, CFG["output_size"])
    assert jnp.all(jnp.isfinite(out))
    assert jnp.allclose(out, ref, atol=2e-2), float(jnp.max(jnp.abs(out - ref)))
    print("KERNEL_OK")
</pallas_src>

<mosaic_0001>
module attributes {stable_mosaic.version = 11 : i64} {
  func.func @_bert_seq_kernel(%arg0: i32, %arg1: memref<1x8x32xf32, #tpu.memory_space<vmem>>, %arg2: memref<1x1x8xf32, #tpu.memory_space<vmem>>, %arg3: memref<1x32xf32, #tpu.memory_space<vmem>>, %arg4: memref<1x32xf32, #tpu.memory_space<vmem>>, %arg5: memref<2x12x32x8xf32, #tpu.memory_space<vmem>>, %arg6: memref<2x12x1x8xf32, #tpu.memory_space<vmem>>, %arg7: memref<2x4x8x32xf32, #tpu.memory_space<vmem>>, %arg8: memref<2x1x32xf32, #tpu.memory_space<vmem>>, %arg9: memref<2x1x32xf32, #tpu.memory_space<vmem>>, %arg10: memref<2x1x32xf32, #tpu.memory_space<vmem>>, %arg11: memref<2x32x64xf32, #tpu.memory_space<vmem>>, %arg12: memref<2x1x64xf32, #tpu.memory_space<vmem>>, %arg13: memref<2x64x32xf32, #tpu.memory_space<vmem>>, %arg14: memref<2x1x32xf32, #tpu.memory_space<vmem>>, %arg15: memref<2x1x32xf32, #tpu.memory_space<vmem>>, %arg16: memref<2x1x32xf32, #tpu.memory_space<vmem>>, %arg17: memref<32x4xf32, #tpu.memory_space<vmem>>, %arg18: memref<1x4xf32, #tpu.memory_space<vmem>>, %arg19: memref<1x1x4xf32, #tpu.memory_space<vmem>>) attributes {dimension_semantics = [#tpu.dimension_semantics<parallel>], iteration_bounds = array<i64: 2>, scalar_prefetch = 0 : i64, scratch_operands = 0 : i64, tpu.core_type = #tpu.core_type<tc>, window_params = [{transform_indices = @transform_0, window_bounds = array<i64: 1, 8, 32>}, {transform_indices = @transform_1, window_bounds = array<i64: 1, 1, 8>}, {pipeline_mode = #tpu.pipeline_mode<synchronous>, transform_indices = @transform_2, window_bounds = array<i64: 1, 32>}, {pipeline_mode = #tpu.pipeline_mode<synchronous>, transform_indices = @transform_3, window_bounds = array<i64: 1, 32>}, {pipeline_mode = #tpu.pipeline_mode<synchronous>, transform_indices = @transform_4, window_bounds = array<i64: 2, 12, 32, 8>}, {pipeline_mode = #tpu.pipeline_mode<synchronous>, transform_indices = @transform_5, window_bounds = array<i64: 2, 12, 1, 8>}, {pipeline_mode = #tpu.pipeline_mode<synchronous>, transform_indices = @transform_6, window_bounds = array<i64: 2, 4, 8, 32>}, {pipeline_mode = #tpu.pipeline_mode<synchronous>, transform_indices = @transform_7, window_bounds = array<i64: 2, 1, 32>}, {pipeline_mode = #tpu.pipeline_mode<synchronous>, transform_indices = @transform_8, window_bounds = array<i64: 2, 1, 32>}, {pipeline_mode = #tpu.pipeline_mode<synchronous>, transform_indices = @transform_9, window_bounds = array<i64: 2, 1, 32>}, {pipeline_mode = #tpu.pipeline_mode<synchronous>, transform_indices = @transform_10, window_bounds = array<i64: 2, 32, 64>}, {pipeline_mode = #tpu.pipeline_mode<synchronous>, transform_indices = @transform_11, window_bounds = array<i64: 2, 1, 64>}, {pipeline_mode = #tpu.pipeline_mode<synchronous>, transform_indices = @transform_12, window_bounds = array<i64: 2, 64, 32>}, {pipeline_mode = #tpu.pipeline_mode<synchronous>, transform_indices = @transform_13, window_bounds = array<i64: 2, 1, 32>}, {pipeline_mode = #tpu.pipeline_mode<synchronous>, transform_indices = @transform_14, window_bounds = array<i64: 2, 1, 32>}, {pipeline_mode = #tpu.pipeline_mode<synchronous>, transform_indices = @transform_15, window_bounds = array<i64: 2, 1, 32>}, {pipeline_mode = #tpu.pipeline_mode<synchronous>, transform_indices = @transform_16, window_bounds = array<i64: 32, 4>}, {pipeline_mode = #tpu.pipeline_mode<synchronous>, transform_indices = @transform_17, window_bounds = array<i64: 1, 4>}, {transform_indices = @transform_18, window_bounds = array<i64: 1, 1, 4>}]} {
    %c0 = arith.constant 0 : index
    %c0_0 = arith.constant 0 : index
    %c0_1 = arith.constant 0 : index
    %0 = vector.load %arg1[%c0, %c0_0, %c0_1] : memref<1x8x32xf32, #tpu.memory_space<vmem>>, vector<1x8x32xf32>
    %1 = vector.shape_cast %0 : vector<1x8x32xf32> to vector<8x32xf32>
    %c0_2 = arith.constant 0 : index
    %c0_3 = arith.constant 0 : index
    %2 = vector.load %arg3[%c0_2, %c0_3] : memref<1x32xf32, #tpu.memory_space<vmem>>, vector<1x32xf32>
    %c0_4 = arith.constant 0 : index
    %c0_5 = arith.constant 0 : index
    %3 = vector.load %arg4[%c0_4, %c0_5] : memref<1x32xf32, #tpu.memory_space<vmem>>, vector<1x32xf32>
    %cst = arith.constant dense<0.000000e+00> : vector<8xf32>
    %4 = vector.multi_reduction <add>, %1, %cst [1] : vector<8x32xf32> to vector<8xf32>
    %5 = vector.shape_cast %4 : vector<8xf32> to vector<8x1xf32>
    %cst_6 = arith.constant 3.200000e+01 : f32
    %6 = vector.broadcast %cst_6 : f32 to vector<8x1xf32>
    %7 = arith.divf %5, %6 : vector<8x1xf32>
    %8 = vector.broadcast %7 : vector<8x1xf32> to vector<8x32xf32>
    %9 = arith.subf %1, %8 : vector<8x32xf32>
    %10 = arith.mulf %9, %9 : vector<8x32xf32>
    %cst_7 = arith.constant dense<0.000000e+00> : vector<8xf32>
    %11 = vector.multi_reduction <add>, %10, %cst_7 [1] : vector<8x32xf32> to vector<8xf32>
    %12 = vector.shape_cast %11 : vector<8xf32> to vector<8x1xf32>
    %cst_8 = arith.constant 3.200000e+01 : f32
    %13 = vector.broadcast %cst_8 : f32 to vector<8x1xf32>
    %14 = arith.divf %12, %13 : vector<8x1xf32>
    %15 = vector.broadcast %7 : vector<8x1xf32> to vector<8x32xf32>
    %16 = arith.subf %1, %15 : vector<8x32xf32>
    %cst_9 = arith.constant 9.99999996E-13 : f32
    %17 = vector.broadcast %cst_9 : f32 to vector<8x1xf32>
    %18 = arith.addf %14, %17 : vector<8x1xf32>
    %19 = math.rsqrt %18 : vector<8x1xf32>
    %20 = vector.broadcast %19 : vector<8x1xf32> to vector<8x32xf32>
    %21 = arith.mulf %16, %20 : vector<8x32xf32>
    %22 = vector.broadcast %2 : vector<1x32xf32> to vector<8x32xf32>
    %23 = arith.mulf %21, %22 : vector<8x32xf32>
    %24 = vector.broadcast %3 : vector<1x32xf32> to vector<8x32xf32>
    %25 = arith.addf %23, %24 : vector<8x32xf32>
    %c0_10 = arith.constant 0 : index
    %c0_11 = arith.constant 0 : index
    %c0_12 = arith.constant 0 : index
    %26 = vector.load %arg2[%c0_10, %c0_11, %c0_12] : memref<1x1x8xf32, #tpu.memory_space<vmem>>, vector<1x1x8xf32>
    %27 = vector.shape_cast %26 : vector<1x1x8xf32> to vector<1x8xf32>
    %28 = vector.shape_cast %25 : vector<8x32xf32> to vector<1x8x32xf32>
    %29 = vector.shape_cast %28 : vector<1x8x32xf32> to vector<1x8x32xf32>
    %30 = vector.broadcast %29 : vector<1x8x32xf32> to vector<12x8x32xf32>
    %c0_13 = arith.constant 0 : index
    %c0_14 = arith.constant 0 : index
    %c0_15 = arith.constant 0 : index
    %c0_16 = arith.constant 0 : index
    %31 = vector.load %arg5[%c0_13, %c0_14, %c0_15, %c0_16] : memref<2x12x32x8xf32, #tpu.memory_space<vmem>>, vector<1x12x32x8xf32>
    %32 = vector.shape_cast %31 : vector<1x12x32x8xf32> to vector<12x32x8xf32>
    "tpu.trace_start"() <{level = 10 : i32, message = "nsh,nhd->nsd"}> : () -> ()
    %cst_17 = arith.constant dense<0.000000e+00> : vector<12x8x8xf32>
    %33 = tpu.matmul %30, %32, %cst_17 {dimension_numbers = #tpu.dot_dimension_numbers<[2], [1], [1], [2], [0, 0, 0, 1, 1, 2], [0], [0]>} : vector<12x8x32xf32>, vector<12x32x8xf32>, vector<12x8x8xf32> -> vector<12x8x8xf32>
    "tpu.trace_stop"() : () -> ()
    %c0_18 = arith.constant 0 : index
    %c0_19 = arith.constant 0 : index
    %c0_20 = arith.constant 0 : index
    %c0_21 = arith.constant 0 : index
    %34 = vector.load %arg6[%c0_18, %c0_19, %c0_20, %c0_21] : memref<2x12x1x8xf32, #tpu.memory_space<vmem>>, vector<1x12x1x8xf32>
    %35 = vector.shape_cast %34 : vector<1x12x1x8xf32> to vector<12x1x8xf32>
    %36 = vector.broadcast %35 : vector<12x1x8xf32> to vector<12x8x8xf32>
    %37 = arith.addf %33, %36 : vector<12x8x8xf32>
    %38 = vector.extract_strided_slice %37 {offsets = [0, 0, 0], sizes = [4, 8, 8], strides = [1, 1, 1]} : vector<12x8x8xf32> to vector<4x8x8xf32>
    %39 = vector.extract_strided_slice %37 {offsets = [4, 0, 0], sizes = [4, 8, 8], strides = [1, 1, 1]} : vector<12x8x8xf32> to vector<4x8x8xf32>
    %40 = vector.extract_strided_slice %37 {offsets = [8, 0, 0], sizes = [4, 8, 8], strides = [1, 1, 1]} : vector<12x8x8xf32> to vector<4x8x8xf32>
    "tpu.trace_start"() <{level = 10 : i32, message = "nqd,nkd->nqk"}> : () -> ()
    %cst_22 = arith.constant dense<0.000000e+00> : vector<4x8x8xf32>
    %41 = tpu.matmul %38, %39, %cst_22 {dimension_numbers = #tpu.dot_dimension_numbers<[2], [2], [1], [1], [0, 0, 0, 1, 1, 1], [0], [0]>} : vector<4x8x8xf32>, vector<4x8x8xf32>, vector<4x8x8xf32> -> vector<4x8x8xf32>
    "tpu.trace_stop"() : () -> ()
    %cst_23 = arith.constant 0.353553385 : f32
    %42 = vector.broadcast %cst_23 : f32 to vector<4x8x8xf32>
    %43 = arith.mulf %41, %42 : vector<4x8x8xf32>
    %44 = vector.shape_cast %27 : vector<1x8xf32> to vector<1x1x8xf32>
    %45 = vector.broadcast %44 : vector<1x1x8xf32> to vector<4x8x8xf32>
    %46 = arith.addf %43, %45 : vector<4x8x8xf32>
    %cst_24 = arith.constant dense<0xFF800000> : vector<4x8xf32>
    %47 = vector.multi_reduction <maximumf>, %46, %cst_24 [2] : vector<4x8x8xf32> to vector<4x8xf32>
    %48 = vector.shape_cast %47 : vector<4x8xf32> to vector<4x8x1xf32>
    %49 = vector.broadcast %48 : vector<4x8x1xf32> to vector<4x8x8xf32>
    %50 = arith.subf %46, %49 : vector<4x8x8xf32>
    %51 = math.exp %50 : vector<4x8x8xf32>
    %cst_25 = arith.constant dense<0.000000e+00> : vector<4x8xf32>
    %52 = vector.multi_reduction <add>, %51, %cst_25 [2] : vector<4x8x8xf32> to vector<4x8xf32>
    %53 = vector.shape_cast %52 : vector<4x8xf32> to vector<4x8x1xf32>
    %54 = tpu.reciprocal %53 {approx = true} : vector<4x8x1xf32> -> vector<4x8x1xf32>
    %55 = vector.broadcast %54 : vector<4x8x1xf32> to vector<4x8x8xf32>
    %56 = arith.mulf %51, %55 : vector<4x8x8xf32>
    "tpu.trace_start"() <{level = 10 : i32, message = "nqk,nkd->nqd"}> : () -> ()
    %cst_26 = arith.constant dense<0.000000e+00> : vector<4x8x8xf32>
    %57 = tpu.matmul %56, %40, %cst_26 {dimension_numbers = #tpu.dot_dimension_numbers<[2], [1], [1], [2], [0, 0, 0, 1, 1, 2], [0], [0]>} : vector<4x8x8xf32>, vector<4x8x8xf32>, vector<4x8x8xf32> -> vector<4x8x8xf32>
    "tpu.trace_stop"() : () -> ()
    %c0_27 = arith.constant 0 : index
    %c0_28 = arith.constant 0 : index
    %c0_29 = arith.constant 0 : index
    %c0_30 = arith.constant 0 : index
    %58 = vector.load %arg7[%c0_27, %c0_28, %c0_29, %c0_30] : memref<2x4x8x32xf32, #tpu.memory_space<vmem>>, vector<1x4x8x32xf32>
    %59 = vector.shape_cast %58 : vector<1x4x8x32xf32> to vector<4x8x32xf32>
    "tpu.trace_start"() <{level = 10 : i32, message = "nsd,ndh->nsh"}> : () -> ()
    %cst_31 = arith.constant dense<0.000000e+00> : vector<4x8x32xf32>
    %60 = tpu.matmul %57, %59, %cst_31 {dimension_numbers = #tpu.dot_dimension_numbers<[2], [1], [1], [2], [0, 0, 0, 1, 1, 2], [0], [0]>} : vector<4x8x8xf32>, vector<4x8x32xf32>, vector<4x8x32xf32> -> vector<4x8x32xf32>
    "tpu.trace_stop"() : () -> ()
    %cst_32 = arith.constant dense<0.000000e+00> : vector<8x32xf32>
    %61 = vector.multi_reduction <add>, %60, %cst_32 [0] : vector<4x8x32xf32> to vector<8x32xf32>
    %c0_33 = arith.constant 0 : index
    %c0_34 = arith.constant 0 : index
    %c0_35 = arith.constant 0 : index
    %62 = vector.load %arg8[%c0_33, %c0_34, %c0_35] : memref<2x1x32xf32, #tpu.memory_space<vmem>>, vector<1x1x32xf32>
    %63 = vector.shape_cast %62 : vector<1x1x32xf32> to vector<1x32xf32>
    %64 = vector.broadcast %63 : vector<1x32xf32> to vector<8x32xf32>
    %65 = arith.addf %61, %64 : vector<8x32xf32>
    %66 = arith.addf %65, %25 : vector<8x32xf32>
    %c0_36 = arith.constant 0 : index
    %c0_37 = arith.constant 0 : index
    %c0_38 = arith.constant 0 : index
    %67 = vector.load %arg9[%c0_36, %c0_37, %c0_38] : memref<2x1x32xf32, #tpu.memory_space<vmem>>, vector<1x1x32xf32>
    %68 = vector.shape_cast %67 : vector<1x1x32xf32> to vector<1x32xf32>
    %c0_39 = arith.constant 0 : index
    %c0_40 = arith.constant 0 : index
    %c0_41 = arith.constant 0 : index
    %69 = vector.load %arg10[%c0_39, %c0_40, %c0_41] : memref<2x1x32xf32, #tpu.memory_space<vmem>>, vector<1x1x32xf32>
    %70 = vector.shape_cast %69 : vector<1x1x32xf32> to vector<1x32xf32>
    %cst_42 = arith.constant dense<0.000000e+00> : vector<8xf32>
    %71 = vector.multi_reduction <add>, %66, %cst_42 [1] : vector<8x32xf32> to vector<8xf32>
    %72 = vector.shape_cast %71 : vector<8xf32> to vector<8x1xf32>
    %cst_43 = arith.constant 3.200000e+01 : f32
    %73 = vector.broadcast %cst_43 : f32 to vector<8x1xf32>
    %74 = arith.divf %72, %73 : vector<8x1xf32>
    %75 = vector.broadcast %74 : vector<8x1xf32> to vector<8x32xf32>
    %76 = arith.subf %66, %75 : vector<8x32xf32>
    %77 = arith.mulf %76, %76 : vector<8x32xf32>
    %cst_44 = arith.constant dense<0.000000e+00> : vector<8xf32>
    %78 = vector.multi_reduction <add>, %77, %cst_44 [1] : vector<8x32xf32> to vector<8xf32>
    %79 = vector.shape_cast %78 : vector<8xf32> to vector<8x1xf32>
    %cst_45 = arith.constant 3.200000e+01 : f32
    %80 = vector.broadcast %cst_45 : f32 to vector<8x1xf32>
    %81 = arith.divf %79, %80 : vector<8x1xf32>
    %82 = vector.broadcast %74 : vector<8x1xf32> to vector<8x32xf32>
    %83 = arith.subf %66, %82 : vector<8x32xf32>
    %cst_46 = arith.constant 9.99999996E-13 : f32
    %84 = vector.broadcast %cst_46 : f32 to vector<8x1xf32>
    %85 = arith.addf %81, %84 : vector<8x1xf32>
    %86 = math.rsqrt %85 : vector<8x1xf32>
    %87 = vector.broadcast %86 : vector<8x1xf32> to vector<8x32xf32>
    %88 = arith.mulf %83, %87 : vector<8x32xf32>
    %89 = vector.broadcast %68 : vector<1x32xf32> to vector<8x32xf32>
    %90 = arith.mulf %88, %89 : vector<8x32xf32>
    %91 = vector.broadcast %70 : vector<1x32xf32> to vector<8x32xf32>
    %92 = arith.addf %90, %91 : vector<8x32xf32>
    %c0_47 = arith.constant 0 : index
    %c0_48 = arith.constant 0 : index
    %c0_49 = arith.constant 0 : index
    %93 = vector.load %arg11[%c0_47, %c0_48, %c0_49] : memref<2x32x64xf32, #tpu.memory_space<vmem>>, vector<1x32x64xf32>
    %94 = vector.shape_cast %93 : vector<1x32x64xf32> to vector<32x64xf32>
    %cst_50 = arith.constant dense<0.000000e+00> : vector<8x64xf32>
    %95 = tpu.matmul %92, %94, %cst_50 {dimension_numbers = #tpu.dot_dimension_numbers<[1], [0], [0], [1], [0, 0, 1, 1], [], []>} : vector<8x32xf32>, vector<32x64xf32>, vector<8x64xf32> -> vector<8x64xf32>
    %c0_51 = arith.constant 0 : index
    %c0_52 = arith.constant 0 : index
    %c0_53 = arith.constant 0 : index
    %96 = vector.load %arg12[%c0_51, %c0_52, %c0_53] : memref<2x1x64xf32, #tpu.memory_space<vmem>>, vector<1x1x64xf32>
    %97 = vector.shape_cast %96 : vector<1x1x64xf32> to vector<1x64xf32>
    %98 = vector.broadcast %97 : vector<1x64xf32> to vector<8x64xf32>
    %99 = arith.addf %95, %98 : vector<8x64xf32>
    %cst_54 = arith.constant 5.000000e-01 : f32
    %100 = vector.broadcast %cst_54 : f32 to vector<8x64xf32>
    %101 = arith.mulf %100, %99 : vector<8x64xf32>
    %cst_55 = arith.constant 4.471500e-02 : f32
    %102 = vector.broadcast %cst_55 : f32 to vector<8x64xf32>
    %103 = arith.mulf %102, %99 : vector<8x64xf32>
    %104 = arith.mulf %103, %99 : vector<8x64xf32>
    %105 = arith.mulf %104, %99 : vector<8x64xf32>
    %106 = arith.addf %99, %105 : vector<8x64xf32>
    %cst_56 = arith.constant 0.797884583 : f32
    %107 = vector.broadcast %cst_56 : f32 to vector<8x64xf32>
    %108 = arith.mulf %107, %106 : vector<8x64xf32>
    %109 = math.tanh %108 : vector<8x64xf32>
    %cst_57 = arith.constant 1.000000e+00 : f32
    %110 = vector.broadcast %cst_57 : f32 to vector<8x64xf32>
    %111 = arith.addf %110, %109 : vector<8x64xf32>
    %112 = arith.mulf %101, %111 : vector<8x64xf32>
    %c0_58 = arith.constant 0 : index
    %c0_59 = arith.constant 0 : index
    %c0_60 = arith.constant 0 : index
    %113 = vector.load %arg13[%c0_58, %c0_59, %c0_60] : memref<2x64x32xf32, #tpu.memory_space<vmem>>, vector<1x64x32xf32>
    %114 = vector.shape_cast %113 : vector<1x64x32xf32> to vector<64x32xf32>
    %cst_61 = arith.constant dense<0.000000e+00> : vector<8x32xf32>
    %115 = tpu.matmul %112, %114, %cst_61 {dimension_numbers = #tpu.dot_dimension_numbers<[1], [0], [0], [1], [0, 0, 1, 1], [], []>} : vector<8x64xf32>, vector<64x32xf32>, vector<8x32xf32> -> vector<8x32xf32>
    %c0_62 = arith.constant 0 : index
    %c0_63 = arith.constant 0 : index
    %c0_64 = arith.constant 0 : index
    %116 = vector.load %arg14[%c0_62, %c0_63, %c0_64] : memref<2x1x32xf32, #tpu.memory_space<vmem>>, vector<1x1x32xf32>
    %117 = vector.shape_cast %116 : vector<1x1x32xf32> to vector<1x32xf32>
    %118 = vector.broadcast %117 : vector<1x32xf32> to vector<8x32xf32>
    %119 = arith.addf %115, %118 : vector<8x32xf32>
    %120 = arith.addf %119, %92 : vector<8x32xf32>
    %c0_65 = arith.constant 0 : index
    %c0_66 = arith.constant 0 : index
    %c0_67 = arith.constant 0 : index
    %121 = vector.load %arg15[%c0_65, %c0_66, %c0_67] : memref<2x1x32xf32, #tpu.memory_space<vmem>>, vector<1x1x32xf32>
    %122 = vector.shape_cast %121 : vector<1x1x32xf32> to vector<1x32xf32>
    %c0_68 = arith.constant 0 : index
    %c0_69 = arith.constant 0 : index
    %c0_70 = arith.constant 0 : index
    %123 = vector.load %arg16[%c0_68, %c0_69, %c0_70] : memref<2x1x32xf32, #tpu.memory_space<vmem>>, vector<1x1x32xf32>
    %124 = vector.shape_cast %123 : vector<1x1x32xf32> to vector<1x32xf32>
    %cst_71 = arith.constant dense<0.000000e+00> : vector<8xf32>
    %125 = vector.multi_reduction <add>, %120, %cst_71 [1] : vector<8x32xf32> to vector<8xf32>
    %126 = vector.shape_cast %125 : vector<8xf32> to vector<8x1xf32>
    %cst_72 = arith.constant 3.200000e+01 : f32
    %127 = vector.broadcast %cst_72 : f32 to vector<8x1xf32>
    %128 = arith.divf %126, %127 : vector<8x1xf32>
    %129 = vector.broadcast %128 : vector<8x1xf32> to vector<8x32xf32>
    %130 = arith.subf %120, %129 : vector<8x32xf32>
    %131 = arith.mulf %130, %130 : vector<8x32xf32>
    %cst_73 = arith.constant dense<0.000000e+00> : vector<8xf32>
    %132 = vector.multi_reduction <add>, %131, %cst_73 [1] : vector<8x32xf32> to vector<8xf32>
    %133 = vector.shape_cast %132 : vector<8xf32> to vector<8x1xf32>
    %cst_74 = arith.constant 3.200000e+01 : f32
    %134 = vector.broadcast %cst_74 : f32 to vector<8x1xf32>
    %135 = arith.divf %133, %134 : vector<8x1xf32>
    %136 = vector.broadcast %128 : vector<8x1xf32> to vector<8x32xf32>
    %137 = arith.subf %120, %136 : vector<8x32xf32>
    %cst_75 = arith.constant 9.99999996E-13 : f32
    %138 = vector.broadcast %cst_75 : f32 to vector<8x1xf32>
    %139 = arith.addf %135, %138 : vector<8x1xf32>
    %140 = math.rsqrt %139 : vector<8x1xf32>
    %141 = vector.broadcast %140 : vector<8x1xf32> to vector<8x32xf32>
    %142 = arith.mulf %137, %141 : vector<8x32xf32>
    %143 = vector.broadcast %122 : vector<1x32xf32> to vector<8x32xf32>
    %144 = arith.mulf %142, %143 : vector<8x32xf32>
    %145 = vector.broadcast %124 : vector<1x32xf32> to vector<8x32xf32>
    %146 = arith.addf %144, %145 : vector<8x32xf32>
    %147 = vector.shape_cast %146 : vector<8x32xf32> to vector<1x8x32xf32>
    %148 = vector.shape_cast %147 : vector<1x8x32xf32> to vector<1x8x32xf32>
    %149 = vector.broadcast %148 : vector<1x8x32xf32> to vector<12x8x32xf32>
    %c1 = arith.constant 1 : index
    %c0_76 = arith.constant 0 : index
    %c0_77 = arith.constant 0 : index
    %c0_78 = arith.constant 0 : index
    %150 = vector.load %arg5[%c1, %c0_76, %c0_77, %c0_78] : memref<2x12x32x8xf32, #tpu.memory_space<vmem>>, vector<1x12x32x8xf32>
    %151 = vector.shape_cast %150 : vector<1x12x32x8xf32> to vector<12x32x8xf32>
    "tpu.trace_start"() <{level = 10 : i32, message = "nsh,nhd->nsd"}> : () -> ()
    %cst_79 = arith.constant dense<0.000000e+00> : vector<12x8x8xf32>
    %152 = tpu.matmul %149, %151, %cst_79 {dimension_numbers = #tpu.dot_dimension_numbers<[2], [1], [1], [2], [0, 0, 0, 1, 1, 2], [0], [0]>} : vector<12x8x32xf32>, vector<12x32x8xf32>, vector<12x8x8xf32> -> vector<12x8x8xf32>
    "tpu.trace_stop"() : () -> ()
    %c1_80 = arith.constant 1 : index
    %c0_81 = arith.constant 0 : index
    %c0_82 = arith.constant 0 : index
    %c0_83 = arith.constant 0 : index
    %153 = vector.load %arg6[%c1_80, %c0_81, %c0_82, %c0_83] : memref<2x12x1x8xf32, #tpu.memory_space<vmem>>, vector<1x12x1x8xf32>
    %154 = vector.shape_cast %153 : vector<1x12x1x8xf32> to vector<12x1x8xf32>
    %155 = vector.broadcast %154 : vector<12x1x8xf32> to vector<12x8x8xf32>
    %156 = arith.addf %152, %155 : vector<12x8x8xf32>
    %157 = vector.extract_strided_slice %156 {offsets = [0, 0, 0], sizes = [4, 8, 8], strides = [1, 1, 1]} : vector<12x8x8xf32> to vector<4x8x8xf32>
    %158 = vector.extract_strided_slice %156 {offsets = [4, 0, 0], sizes = [4, 8, 8], strides = [1, 1, 1]} : vector<12x8x8xf32> to vector<4x8x8xf32>
    %159 = vector.extract_strided_slice %156 {offsets = [8, 0, 0], sizes = [4, 8, 8], strides = [1, 1, 1]} : vector<12x8x8xf32> to vector<4x8x8xf32>
    "tpu.trace_start"() <{level = 10 : i32, message = "nqd,nkd->nqk"}> : () -> ()
    %cst_84 = arith.constant dense<0.000000e+00> : vector<4x8x8xf32>
    %160 = tpu.matmul %157, %158, %cst_84 {dimension_numbers = #tpu.dot_dimension_numbers<[2], [2], [1], [1], [0, 0, 0, 1, 1, 1], [0], [0]>} : vector<4x8x8xf32>, vector<4x8x8xf32>, vector<4x8x8xf32> -> vector<4x8x8xf32>
    "tpu.trace_stop"() : () -> ()
    %cst_85 = arith.constant 0.353553385 : f32
    %161 = vector.broadcast %cst_85 : f32 to vector<4x8x8xf32>
    %162 = arith.mulf %160, %161 : vector<4x8x8xf32>
    %163 = vector.shape_cast %27 : vector<1x8xf32> to vector<1x1x8xf32>
    %164 = vector.broadcast %163 : vector<1x1x8xf32> to vector<4x8x8xf32>
    %165 = arith.addf %162, %164 : vector<4x8x8xf32>
    %cst_86 = arith.constant dense<0xFF800000> : vector<4x8xf32>
    %166 = vector.multi_reduction <maximumf>, %165, %cst_86 [2] : vector<4x8x8xf32> to vector<4x8xf32>
    %167 = vector.shape_cast %166 : vector<4x8xf32> to vector<4x8x1xf32>
    %168 = vector.broadcast %167 : vector<4x8x1xf32> to vector<4x8x8xf32>
    %169 = arith.subf %165, %168 : vector<4x8x8xf32>
    %170 = math.exp %169 : vector<4x8x8xf32>
    %cst_87 = arith.constant dense<0.000000e+00> : vector<4x8xf32>
    %171 = vector.multi_reduction <add>, %170, %cst_87 [2] : vector<4x8x8xf32> to vector<4x8xf32>
    %172 = vector.shape_cast %171 : vector<4x8xf32> to vector<4x8x1xf32>
    %173 = tpu.reciprocal %172 {approx = true} : vector<4x8x1xf32> -> vector<4x8x1xf32>
    %174 = vector.broadcast %173 : vector<4x8x1xf32> to vector<4x8x8xf32>
    %175 = arith.mulf %170, %174 : vector<4x8x8xf32>
    "tpu.trace_start"() <{level = 10 : i32, message = "nqk,nkd->nqd"}> : () -> ()
    %cst_88 = arith.constant dense<0.000000e+00> : vector<4x8x8xf32>
    %176 = tpu.matmul %175, %159, %cst_88 {dimension_numbers = #tpu.dot_dimension_numbers<[2], [1], [1], [2], [0, 0, 0, 1, 1, 2], [0], [0]>} : vector<4x8x8xf32>, vector<4x8x8xf32>, vector<4x8x8xf32> -> vector<4x8x8xf32>
    "tpu.trace_stop"() : () -> ()
    %c1_89 = arith.constant 1 : index
    %c0_90 = arith.constant 0 : index
    %c0_91 = arith.constant 0 : index
    %c0_92 = arith.constant 0 : index
    %177 = vector.load %arg7[%c1_89, %c0_90, %c0_91, %c0_92] : memref<2x4x8x32xf32, #tpu.memory_space<vmem>>, vector<1x4x8x32xf32>
    %178 = vector.shape_cast %177 : vector<1x4x8x32xf32> to vector<4x8x32xf32>
    "tpu.trace_start"() <{level = 10 : i32, message = "nsd,ndh->nsh"}> : () -> ()
    %cst_93 = arith.constant dense<0.000000e+00> : vector<4x8x32xf32>
    %179 = tpu.matmul %176, %178, %cst_93 {dimension_numbers = #tpu.dot_dimension_numbers<[2], [1], [1], [2], [0, 0, 0, 1, 1, 2], [0], [0]>} : vector<4x8x8xf32>, vector<4x8x32xf32>, vector<4x8x32xf32> -> vector<4x8x32xf32>
    "tpu.trace_stop"() : () -> ()
    %cst_94 = arith.constant dense<0.000000e+00> : vector<8x32xf32>
    %180 = vector.multi_reduction <add>, %179, %cst_94 [0] : vector<4x8x32xf32> to vector<8x32xf32>
    %c1_95 = arith.constant 1 : index
    %c0_96 = arith.constant 0 : index
    %c0_97 = arith.constant 0 : index
    %181 = vector.load %arg8[%c1_95, %c0_96, %c0_97] : memref<2x1x32xf32, #tpu.memory_space<vmem>>, vector<1x1x32xf32>
    %182 = vector.shape_cast %181 : vector<1x1x32xf32> to vector<1x32xf32>
    %183 = vector.broadcast %182 : vector<1x32xf32> to vector<8x32xf32>
    %184 = arith.addf %180, %183 : vector<8x32xf32>
    %185 = arith.addf %184, %146 : vector<8x32xf32>
    %c1_98 = arith.constant 1 : index
    %c0_99 = arith.constant 0 : index
    %c0_100 = arith.constant 0 : index
    %186 = vector.load %arg9[%c1_98, %c0_99, %c0_100] : memref<2x1x32xf32, #tpu.memory_space<vmem>>, vector<1x1x32xf32>
    %187 = vector.shape_cast %186 : vector<1x1x32xf32> to vector<1x32xf32>
    %c1_101 = arith.constant 1 : index
    %c0_102 = arith.constant 0 : index
    %c0_103 = arith.constant 0 : index
    %188 = vector.load %arg10[%c1_101, %c0_102, %c0_103] : memref<2x1x32xf32, #tpu.memory_space<vmem>>, vector<1x1x32xf32>
    %189 = vector.shape_cast %188 : vector<1x1x32xf32> to vector<1x32xf32>
    %cst_104 = arith.constant dense<0.000000e+00> : vector<8xf32>
    %190 = vector.multi_reduction <add>, %185, %cst_104 [1] : vector<8x32xf32> to vector<8xf32>
    %191 = vector.shape_cast %190 : vector<8xf32> to vector<8x1xf32>
    %cst_105 = arith.constant 3.200000e+01 : f32
    %192 = vector.broadcast %cst_105 : f32 to vector<8x1xf32>
    %193 = arith.divf %191, %192 : vector<8x1xf32>
    %194 = vector.broadcast %193 : vector<8x1xf32> to vector<8x32xf32>
    %195 = arith.subf %185, %194 : vector<8x32xf32>
    %196 = arith.mulf %195, %195 : vector<8x32xf32>
    %cst_106 = arith.constant dense<0.000000e+00> : vector<8xf32>
    %197 = vector.multi_reduction <add>, %196, %cst_106 [1] : vector<8x32xf32> to vector<8xf32>
    %198 = vector.shape_cast %197 : vector<8xf32> to vector<8x1xf32>
    %cst_107 = arith.constant 3.200000e+01 : f32
    %199 = vector.broadcast %cst_107 : f32 to vector<8x1xf32>
    %200 = arith.divf %198, %199 : vector<8x1xf32>
    %201 = vector.broadcast %193 : vector<8x1xf32> to vector<8x32xf32>
    %202 = arith.subf %185, %201 : vector<8x32xf32>
    %cst_108 = arith.constant 9.99999996E-13 : f32
    %203 = vector.broadcast %cst_108 : f32 to vector<8x1xf32>
    %204 = arith.addf %200, %203 : vector<8x1xf32>
    %205 = math.rsqrt %204 : vector<8x1xf32>
    %206 = vector.broadcast %205 : vector<8x1xf32> to vector<8x32xf32>
    %207 = arith.mulf %202, %206 : vector<8x32xf32>
    %208 = vector.broadcast %187 : vector<1x32xf32> to vector<8x32xf32>
    %209 = arith.mulf %207, %208 : vector<8x32xf32>
    %210 = vector.broadcast %189 : vector<1x32xf32> to vector<8x32xf32>
    %211 = arith.addf %209, %210 : vector<8x32xf32>
    %c1_109 = arith.constant 1 : index
    %c0_110 = arith.constant 0 : index
    %c0_111 = arith.constant 0 : index
    %212 = vector.load %arg11[%c1_109, %c0_110, %c0_111] : memref<2x32x64xf32, #tpu.memory_space<vmem>>, vector<1x32x64xf32>
    %213 = vector.shape_cast %212 : vector<1x32x64xf32> to vector<32x64xf32>
    %cst_112 = arith.constant dense<0.000000e+00> : vector<8x64xf32>
    %214 = tpu.matmul %211, %213, %cst_112 {dimension_numbers = #tpu.dot_dimension_numbers<[1], [0], [0], [1], [0, 0, 1, 1], [], []>} : vector<8x32xf32>, vector<32x64xf32>, vector<8x64xf32> -> vector<8x64xf32>
    %c1_113 = arith.constant 1 : index
    %c0_114 = arith.constant 0 : index
    %c0_115 = arith.constant 0 : index
    %215 = vector.load %arg12[%c1_113, %c0_114, %c0_115] : memref<2x1x64xf32, #tpu.memory_space<vmem>>, vector<1x1x64xf32>
    %216 = vector.shape_cast %215 : vector<1x1x64xf32> to vector<1x64xf32>
    %217 = vector.broadcast %216 : vector<1x64xf32> to vector<8x64xf32>
    %218 = arith.addf %214, %217 : vector<8x64xf32>
    %cst_116 = arith.constant 5.000000e-01 : f32
    %219 = vector.broadcast %cst_116 : f32 to vector<8x64xf32>
    %220 = arith.mulf %219, %218 : vector<8x64xf32>
    %cst_117 = arith.constant 4.471500e-02 : f32
    %221 = vector.broadcast %cst_117 : f32 to vector<8x64xf32>
    %222 = arith.mulf %221, %218 : vector<8x64xf32>
    %223 = arith.mulf %222, %218 : vector<8x64xf32>
    %224 = arith.mulf %223, %218 : vector<8x64xf32>
    %225 = arith.addf %218, %224 : vector<8x64xf32>
    %cst_118 = arith.constant 0.797884583 : f32
    %226 = vector.broadcast %cst_118 : f32 to vector<8x64xf32>
    %227 = arith.mulf %226, %225 : vector<8x64xf32>
    %228 = math.tanh %227 : vector<8x64xf32>
    %cst_119 = arith.constant 1.000000e+00 : f32
    %229 = vector.broadcast %cst_119 : f32 to vector<8x64xf32>
    %230 = arith.addf %229, %228 : vector<8x64xf32>
    %231 = arith.mulf %220, %230 : vector<8x64xf32>
    %c1_120 = arith.constant 1 : index
    %c0_121 = arith.constant 0 : index
    %c0_122 = arith.constant 0 : index
    %232 = vector.load %arg13[%c1_120, %c0_121, %c0_122] : memref<2x64x32xf32, #tpu.memory_space<vmem>>, vector<1x64x32xf32>
    %233 = vector.shape_cast %232 : vector<1x64x32xf32> to vector<64x32xf32>
    %cst_123 = arith.constant dense<0.000000e+00> : vector<8x32xf32>
    %234 = tpu.matmul %231, %233, %cst_123 {dimension_numbers = #tpu.dot_dimension_numbers<[1], [0], [0], [1], [0, 0, 1, 1], [], []>} : vector<8x64xf32>, vector<64x32xf32>, vector<8x32xf32> -> vector<8x32xf32>
    %c1_124 = arith.constant 1 : index
    %c0_125 = arith.constant 0 : index
    %c0_126 = arith.constant 0 : index
    %235 = vector.load %arg14[%c1_124, %c0_125, %c0_126] : memref<2x1x32xf32, #tpu.memory_space<vmem>>, vector<1x1x32xf32>
    %236 = vector.shape_cast %235 : vector<1x1x32xf32> to vector<1x32xf32>
    %237 = vector.broadcast %236 : vector<1x32xf32> to vector<8x32xf32>
    %238 = arith.addf %234, %237 : vector<8x32xf32>
    %239 = arith.addf %238, %211 : vector<8x32xf32>
    %c1_127 = arith.constant 1 : index
    %c0_128 = arith.constant 0 : index
    %c0_129 = arith.constant 0 : index
    %240 = vector.load %arg15[%c1_127, %c0_128, %c0_129] : memref<2x1x32xf32, #tpu.memory_space<vmem>>, vector<1x1x32xf32>
    %241 = vector.shape_cast %240 : vector<1x1x32xf32> to vector<1x32xf32>
    %c1_130 = arith.constant 1 : index
    %c0_131 = arith.constant 0 : index
    %c0_132 = arith.constant 0 : index
    %242 = vector.load %arg16[%c1_130, %c0_131, %c0_132] : memref<2x1x32xf32, #tpu.memory_space<vmem>>, vector<1x1x32xf32>
    %243 = vector.shape_cast %242 : vector<1x1x32xf32> to vector<1x32xf32>
    %cst_133 = arith.constant dense<0.000000e+00> : vector<8xf32>
    %244 = vector.multi_reduction <add>, %239, %cst_133 [1] : vector<8x32xf32> to vector<8xf32>
    %245 = vector.shape_cast %244 : vector<8xf32> to vector<8x1xf32>
    %cst_134 = arith.constant 3.200000e+01 : f32
    %246 = vector.broadcast %cst_134 : f32 to vector<8x1xf32>
    %247 = arith.divf %245, %246 : vector<8x1xf32>
    %248 = vector.broadcast %247 : vector<8x1xf32> to vector<8x32xf32>
    %249 = arith.subf %239, %248 : vector<8x32xf32>
    %250 = arith.mulf %249, %249 : vector<8x32xf32>
    %cst_135 = arith.constant dense<0.000000e+00> : vector<8xf32>
    %251 = vector.multi_reduction <add>, %250, %cst_135 [1] : vector<8x32xf32> to vector<8xf32>
    %252 = vector.shape_cast %251 : vector<8xf32> to vector<8x1xf32>
    %cst_136 = arith.constant 3.200000e+01 : f32
    %253 = vector.broadcast %cst_136 : f32 to vector<8x1xf32>
    %254 = arith.divf %252, %253 : vector<8x1xf32>
    %255 = vector.broadcast %247 : vector<8x1xf32> to vector<8x32xf32>
    %256 = arith.subf %239, %255 : vector<8x32xf32>
    %cst_137 = arith.constant 9.99999996E-13 : f32
    %257 = vector.broadcast %cst_137 : f32 to vector<8x1xf32>
    %258 = arith.addf %254, %257 : vector<8x1xf32>
    %259 = math.rsqrt %258 : vector<8x1xf32>
    %260 = vector.broadcast %259 : vector<8x1xf32> to vector<8x32xf32>
    %261 = arith.mulf %256, %260 : vector<8x32xf32>
    %262 = vector.broadcast %241 : vector<1x32xf32> to vector<8x32xf32>
    %263 = arith.mulf %261, %262 : vector<8x32xf32>
    %264 = vector.broadcast %243 : vector<1x32xf32> to vector<8x32xf32>
    %265 = arith.addf %263, %264 : vector<8x32xf32>
    %266 = vector.extract_strided_slice %265 {offsets = [0, 0], sizes = [1, 32], strides = [1, 1]} : vector<8x32xf32> to vector<1x32xf32>
    %c0_138 = arith.constant 0 : index
    %c0_139 = arith.constant 0 : index
    %267 = vector.load %arg17[%c0_138, %c0_139] : memref<32x4xf32, #tpu.memory_space<vmem>>, vector<32x4xf32>
    %cst_140 = arith.constant dense<0.000000e+00> : vector<1x4xf32>
    %268 = tpu.matmul %266, %267, %cst_140 {dimension_numbers = #tpu.dot_dimension_numbers<[1], [0], [0], [1], [0, 0, 1, 1], [], []>} : vector<1x32xf32>, vector<32x4xf32>, vector<1x4xf32> -> vector<1x4xf32>
    %c0_141 = arith.constant 0 : index
    %c0_142 = arith.constant 0 : index
    %269 = vector.load %arg18[%c0_141, %c0_142] : memref<1x4xf32, #tpu.memory_space<vmem>>, vector<1x4xf32>
    %270 = arith.addf %268, %269 : vector<1x4xf32>
    %271 = vector.shape_cast %270 : vector<1x4xf32> to vector<1x1x4xf32>
    %c0_143 = arith.constant 0 : index
    %c0_144 = arith.constant 0 : index
    %c0_145 = arith.constant 0 : index
    %272 = vector.load %arg19[%c0_143, %c0_144, %c0_145] : memref<1x1x4xf32, #tpu.memory_space<vmem>>, vector<1x1x4xf32>
    tpu.vector_store %arg19[%c0_143, %c0_144, %c0_145], %271 {strides = array<i32>} : memref<1x1x4xf32, #tpu.memory_space<vmem>>, vector<1x1x4xf32>,
    return
  }
  func.func @transform_0(%arg0: i32) -> (i32, i32, i32) {
    %c0_i32 = arith.constant 0 : i32
    %c0_i32_0 = arith.constant 0 : i32
    %c0_i32_1 = arith.constant 0 : i32
    return %arg0, %c0_i32, %c0_i32_0 : i32, i32, i32
  }
  func.func @transform_1(%arg0: i32) -> (i32, i32, i32) {
    %c0_i32 = arith.constant 0 : i32
    %c0_i32_0 = arith.constant 0 : i32
    %c0_i32_1 = arith.constant 0 : i32
    return %arg0, %c0_i32, %c0_i32_0 : i32, i32, i32
  }
  func.func @transform_2(%arg0: i32) -> (i32, i32) {
    %c0_i32 = arith.constant 0 : i32
    %c0_i32_0 = arith.constant 0 : i32
    %c0_i32_1 = arith.constant 0 : i32
    return %c0_i32, %c0_i32_0 : i32, i32
  }
  func.func @transform_3(%arg0: i32) -> (i32, i32) {
    %c0_i32 = arith.constant 0 : i32
    %c0_i32_0 = arith.constant 0 : i32
    %c0_i32_1 = arith.constant 0 : i32
    return %c0_i32, %c0_i32_0 : i32, i32
  }
  func.func @transform_4(%arg0: i32) -> (i32, i32, i32, i32) {
    %c0_i32 = arith.constant 0 : i32
    %c0_i32_0 = arith.constant 0 : i32
    %c0_i32_1 = arith.constant 0 : i32
    %c0_i32_2 = arith.constant 0 : i32
    %c0_i32_3 = arith.constant 0 : i32
    return %c0_i32, %c0_i32_0, %c0_i32_1, %c0_i32_2 : i32, i32, i32, i32
  }
  func.func @transform_5(%arg0: i32) -> (i32, i32, i32, i32) {
    %c0_i32 = arith.constant 0 : i32
    %c0_i32_0 = arith.constant 0 : i32
    %c0_i32_1 = arith.constant 0 : i32
    %c0_i32_2 = arith.constant 0 : i32
    %c0_i32_3 = arith.constant 0 : i32
    return %c0_i32, %c0_i32_0, %c0_i32_1, %c0_i32_2 : i32, i32, i32, i32
  }
  func.func @transform_6(%arg0: i32) -> (i32, i32, i32, i32) {
    %c0_i32 = arith.constant 0 : i32
    %c0_i32_0 = arith.constant 0 : i32
    %c0_i32_1 = arith.constant 0 : i32
    %c0_i32_2 = arith.constant 0 : i32
    %c0_i32_3 = arith.constant 0 : i32
    return %c0_i32, %c0_i32_0, %c0_i32_1, %c0_i32_2 : i32, i32, i32, i32
  }
  func.func @transform_7(%arg0: i32) -> (i32, i32, i32) {
    %c0_i32 = arith.constant 0 : i32
    %c0_i32_0 = arith.constant 0 : i32
    %c0_i32_1 = arith.constant 0 : i32
    %c0_i32_2 = arith.constant 0 : i32
    return %c0_i32, %c0_i32_0, %c0_i32_1 : i32, i32, i32
  }
  func.func @transform_8(%arg0: i32) -> (i32, i32, i32) {
    %c0_i32 = arith.constant 0 : i32
    %c0_i32_0 = arith.constant 0 : i32
    %c0_i32_1 = arith.constant 0 : i32
    %c0_i32_2 = arith.constant 0 : i32
    return %c0_i32, %c0_i32_0, %c0_i32_1 : i32, i32, i32
  }
  func.func @transform_9(%arg0: i32) -> (i32, i32, i32) {
    %c0_i32 = arith.constant 0 : i32
    %c0_i32_0 = arith.constant 0 : i32
    %c0_i32_1 = arith.constant 0 : i32
    %c0_i32_2 = arith.constant 0 : i32
    return %c0_i32, %c0_i32_0, %c0_i32_1 : i32, i32, i32
  }
  func.func @transform_10(%arg0: i32) -> (i32, i32, i32) {
    %c0_i32 = arith.constant 0 : i32
    %c0_i32_0 = arith.constant 0 : i32
    %c0_i32_1 = arith.constant 0 : i32
    %c0_i32_2 = arith.constant 0 : i32
    return %c0_i32, %c0_i32_0, %c0_i32_1 : i32, i32, i32
  }
  func.func @transform_11(%arg0: i32) -> (i32, i32, i32) {
    %c0_i32 = arith.constant 0 : i32
    %c0_i32_0 = arith.constant 0 : i32
    %c0_i32_1 = arith.constant 0 : i32
    %c0_i32_2 = arith.constant 0 : i32
    return %c0_i32, %c0_i32_0, %c0_i32_1 : i32, i32, i32
  }
  func.func @transform_12(%arg0: i32) -> (i32, i32, i32) {
    %c0_i32 = arith.constant 0 : i32
    %c0_i32_0 = arith.constant 0 : i32
    %c0_i32_1 = arith.constant 0 : i32
    %c0_i32_2 = arith.constant 0 : i32
    return %c0_i32, %c0_i32_0, %c0_i32_1 : i32, i32, i32
  }
  func.func @transform_13(%arg0: i32) -> (i32, i32, i32) {
    %c0_i32 = arith.constant 0 : i32
    %c0_i32_0 = arith.constant 0 : i32
    %c0_i32_1 = arith.constant 0 : i32
    %c0_i32_2 = arith.constant 0 : i32
    return %c0_i32, %c0_i32_0, %c0_i32_1 : i32, i32, i32
  }
  func.func @transform_14(%arg0: i32) -> (i32, i32, i32) {
    %c0_i32 = arith.constant 0 : i32
    %c0_i32_0 = arith.constant 0 : i32
    %c0_i32_1 = arith.constant 0 : i32
    %c0_i32_2 = arith.constant 0 : i32
    return %c0_i32, %c0_i32_0, %c0_i32_1 : i32, i32, i32
  }
  func.func @transform_15(%arg0: i32) -> (i32, i32, i32) {
    %c0_i32 = arith.constant 0 : i32
    %c0_i32_0 = arith.constant 0 : i32
    %c0_i32_1 = arith.constant 0 : i32
    %c0_i32_2 = arith.constant 0 : i32
    return %c0_i32, %c0_i32_0, %c0_i32_1 : i32, i32, i32
  }
  func.func @transform_16(%arg0: i32) -> (i32, i32) {
    %c0_i32 = arith.constant 0 : i32
    %c0_i32_0 = arith.constant 0 : i32
    %c0_i32_1 = arith.constant 0 : i32
    return %c0_i32, %c0_i32_0 : i32, i32
  }
  func.func @transform_17(%arg0: i32) -> (i32, i32) {
    %c0_i32 = arith.constant 0 : i32
    %c0_i32_0 = arith.constant 0 : i32
    %c0_i32_1 = arith.constant 0 : i32
    return %c0_i32, %c0_i32_0 : i32, i32
  }
  func.func @transform_18(%arg0: i32) -> (i32, i32, i32) {
    %c0_i32 = arith.constant 0 : i32
    %c0_i32_0 = arith.constant 0 : i32
    %c0_i32_1 = arith.constant 0 : i32
    return %arg0, %c0_i32, %c0_i32_0 : i32, i32, i32
  }
}

</mosaic_0001>

<bundles_post_ra>
// kernel: tpu_custom_call.1
= control target key start
LH: loop header
LB: loop body
LE: loop exit
PB: predicated region body
PF: predicated region fallthrough
CT: control target
= control target key end

     0   :  { %s7260_s0 = inlined_call_operand.vmem [shape: f32[2,8,32], index: 0, kind: input, shape index: {}]   ;;  %s7261_s1 = inlined_call_operand.vmem [shape: f32[2,1,8], index: 1, kind: input, shape index: {}]   ;;  %s7262_s2 = inlined_call_operand.vmem [shape: f32[1,32], index: 2, kind: input, shape index: {}]   ;;  %s7263_s3 = inlined_call_operand.vmem [shape: f32[1,32], index: 3, kind: input, shape index: {}]   ;;  %s7264_s4 = inlined_call_operand.vmem [shape: f32[2,12,32,8], index: 4, kind: input, shape index: {}]   ;;  %s7265_s5 = inlined_call_operand.vmem [shape: f32[2,12,1,8], index: 5, kind: input, shape index: {}]   ;;  %s7266_s6 = inlined_call_operand.vmem [shape: f32[2,4,8,32], index: 6, kind: input, shape index: {}]   ;;  %s7267_s7 = inlined_call_operand.vmem [shape: f32[2,1,32], index: 7, kind: input, shape index: {}]   ;;  %s7268_s8 = inlined_call_operand.vmem [shape: f32[2,1,32], index: 8, kind: input, shape index: {}]   ;;  %s7269_s9 = inlined_call_operand.vmem [shape: f32[2,1,32], index: 9, kind: input, shape index: {}]   ;;  %s7270_s10 = inlined_call_operand.vmem [shape: f32[2,32,64], index: 10, kind: input, shape index: {}]   ;;  %s7271_s11 = inlined_call_operand.vmem [shape: f32[2,1,64], index: 11, kind: input, shape index: {}]   ;;  %s7272_s12 = inlined_call_operand.vmem [shape: f32[2,64,32], index: 12, kind: input, shape index: {}]   ;;  %s7273_s13 = inlined_call_operand.vmem [shape: f32[2,1,32], index: 13, kind: input, shape index: {}]   ;;  %s7274_s14 = inlined_call_operand.vmem [shape: f32[2,1,32], index: 14, kind: input, shape index: {}]   ;;  %s7275_s15 = inlined_call_operand.vmem [shape: f32[2,1,32], index: 15, kind: input, shape index: {}]   ;;  %s7276_s16 = inlined_call_operand.vmem [shape: f32[32,4], index: 16, kind: input, shape index: {}]   ;;  %s7277_s17 = inlined_call_operand.vmem [shape: f32[1,4], index: 17, kind: input, shape index: {}]   ;;  %s7278_s18 = inlined_call_operand.hbm [shape: f32[2,1,4], index: 18, kind: output, shape index: {}]  }
   0x1   :  { %7283 = sst [smem:[#allocation9_spill]] %s7260_s0 }
   0x2   :  { %7284 = sst [smem:[#allocation10_spill]] %s7261_s1 }
   0x3   :  { %7285 = sst [smem:[#allocation11_spill]] %s7262_s2 }
   0x4   :  { %7286 = sst [smem:[#allocation12_spill]] %s7263_s3 }
   0x5   :  { %23 = vsyncpa [#allocation3], 0 }
   0x6   :  { %25 = vsyncpa [#allocation3 + $0x1], 0  ;;  %s6240_s27 = smov 0   ;;  %s6242_s28 = smov 0  }
   0x7   :  { %s6244_s29 = smov 0   ;;  %s6246_s30 = smov 0  }
   0x8 LB: > { %7287 = sst [smem:[#allocation5_spill]] %s6136_s29  ;;  %s6261_s0 = sadd.s32 4294967295, %s6140_s30   ;;  %s6140_s30 = sphi %s6246_s30, %s7298_s30   ;;  %s6136_s29 = sphi %s6244_s29, %s7300_s29   ;;  %s6132_s28 = sphi %s6242_s28, %s7302_s28   ;;  %s6128_s27 = sphi %s6240_s27, %s7301_s27  }
   0x9   : > { %s5144_s19 = sadd.s32 4294967294, %s6140_s30   ;;  %s6265_s1 = sadd.s32 1, %s6140_s30  }
   0xa   : > { %7288 = sst [smem:[#allocation6_spill]] %s6265_s1  ;;  %s426_s20 = sadd.s32 1, %s6136_s29 }
   0xb   : > { %s423_s21 = ssub.s32 %s6140_s30, %s6265_s1  ;;  %p436_p0 = scmp.ne.s32.totalorder %s6136_s29, %s6132_s28 }
   0xc   : > { %p424_p1 = scmp.eq.s32.totalorder %s423_s21, 0  ;;  %p437_p2 = scmp.eq.s32.totalorder %s6261_s0, 1 }
   0xd   : > { %p442_p3 = scmp.ne.s32.totalorder %s6132_s28, %s6128_s27  ;;  %p443_p4 = scmp.eq.s32.totalorder %s5144_s19, 1 }
   0xe   : > { %s6276_s22 = scalar_select %p424_p1, %s6136_s29, %s426_s20  }
   0xf   : > { %p6278_p5 = por %p437_p2, %p436_p0  ;;  %p6282_p6 = por %p443_p4, %p442_p3 }
  0x10   : > { %7289 = sst [smem:[#allocation7_spill]] %s6276_s22  ;;  %p5147_p7 = scmp.ge.s32.totalorder %s6140_s30, 1 }
  0x11   : > { %s7291_s23 = scalar_select %p6282_p6, 1, 0 }
  0x12   : > { %p522_p8 = scmp.lt.s32.totalorder %s6140_s30, 3 }
  0x13   : > { %7292 = sst [smem:[#allocation8_spill]] %s7291_s23 }
  0x14   : > { %p523_p9 = pnand %p5147_p7, %p522_p8 }
  0x15   : > { %p577_p10 = scmp.lt.s32.totalorder (!%p523_p9), %s6261_s0, 1  ;;  %s7293_s20 = sld [smem:[#allocation9_spill]] (!%p523_p9) }
  0x16   : > { %526 = sbr.rel (%p523_p9) target bundleno = 4891 (0x131b), region = 92  ;;  %s7295_s3 = sld [smem:[#allocation12_spill]] (!%p523_p9) }
  0x17   : > { %s575_s23 = sand.u32 (!%p523_p9), 1, %s6132_s28  }
  0x18   : > { %s5068_s26 = scalar_lea.sflag (!%p523_p9), [#allocation3], %s575_s23 }
  0x1b   : > { %s6290_s24 = scalar_select %p577_p10, %s6261_s0, 1  ;;  %vm587_vm0 = vcmask 261120   ;;  %v6142_v7 = vmov 0.0   ;;  %v620_v8 = vld [vmem:[%s7264_s4 + $0x18] sm:$0xff]  ;;  %v619_v10 = vld [vmem:[%s7264_s4 + $0x10] sm:$0xff]  ;;  %v618_v12 = vld [vmem:[%s7264_s4 + $0x8] sm:$0xff] }
  0x1c   : > { %5538 = vmatprep.subr.mxu0 %v6142_v7  ;;  %5549 = vmatprep.subr.mxu1 %v6142_v7  ;;  %v624_v9 = vld [vmem:[%s7264_s4 + $0x38] sm:$0xff]  ;;  %v623_v11 = vld [vmem:[%s7264_s4 + $0x30] sm:$0xff]  ;;  %v622_v13 = vld [vmem:[%s7264_s4 + $0x28] sm:$0xff]  ;;  %vm6143_vm1 = vmmov 0   ;;  %vm1592_vm2 = vcmask 64512   ;;  %vm2696_vm3 = vcmask 523264  }
  0x1d   : > { %s5148_s25 = sshll.u32 %s6290_s24, 3  ;;  %5539 = vmatpush3.msra.mxu0 %v620_v8  ;;  %5550 = vmatpush3.msra.mxu1 %v624_v9  ;;  %v617_v14 = vld [vmem:[%s7264_s4] sm:$0xff]  ;;  %v628_v25 = vld [vmem:[%s7264_s4 + $0x58] sm:$0xff]  ;;  %v627_v27 = vld [vmem:[%s7264_s4 + $0x50] sm:$0xff]  ;;  %vm5065_vm4 = vcmask 24576  }
  0x1e   : > { %s580_s21 = scalar_lea.vmem %s7293_s20, %s5148_s25  ;;  %5540 = vmatprep.subr.mxu0 %v6142_v7  ;;  %5551 = vmatprep.subr.mxu1 %v6142_v7  ;;  %v621_v15 = vld [vmem:[%s7264_s4 + $0x20] sm:$0xff]  ;;  %s7294_s25 = sld [smem:[#allocation11_spill]]  ;;  %v632_v26 = vld [vmem:[%s7264_s4 + $0x78] sm:$0xff]  ;;  %v631_v28 = vld [vmem:[%s7264_s4 + $0x70] sm:$0xff] }
  0x1f   : > { %v584_v0 = vld [vmem:[%s580_s21] sm:$0xff]  ;;  %5541 = vmatpush3.msra.mxu0 %v619_v10  ;;  %5552 = vmatpush3.msra.mxu1 %v623_v11  ;;  %v626_v29 = vld [vmem:[%s7264_s4 + $0x48] sm:$0xff]  ;;  %v636_v33 = vld [vmem:[%s7264_s4 + $0x98] sm:$0xff]  ;;  %s7296_s21 = sld [smem:[#allocation10_spill]]  ;;  %s5334_s20 = sshll.u32 %s6261_s0, 4 }
  0x20   : > { %v588_v1 = vsel %vm587_vm0, %v584_v0, 0.0  ;;  %5542 = vmatprep.subr.mxu0 %v6142_v7  ;;  %5553 = vmatprep.subr.mxu1 %v6142_v7  ;;  %v5150_v22 = vld [vmem:[%s7295_s3] ss:$0 sm:$0xff]  ;;  %v630_v30 = vld [vmem:[%s7264_s4 + $0x68] sm:$0xff]  ;;  %v640_v34 = vld [vmem:[%s7264_s4 + $0xb8] sm:$0xff]  ;;  %s6144_s0 = smov [#allocation2]  }
  0x21   : > { %589 = vadd.xlane.f32.xlu0 %v588_v1  ;;  %5543 = vmatpush3.msra.mxu0 %v618_v12  ;;  %v625_v31 = vld [vmem:[%s7264_s4 + $0x40] sm:$0xff]  ;;  %v635_v35 = vld [vmem:[%s7264_s4 + $0x90] sm:$0xff]  ;;  %v634_v37 = vld [vmem:[%s7264_s4 + $0x88] sm:$0xff]  ;;  %s6084_s1 = sshll.u32 %s6144_s0, 4  ;;  %s6085_s1 = int_to_ptr.vmem [resolvable:$false] %s6084_s1 }
  0x22   : > { %5554 = vmatpush3.msra.mxu1 %v622_v13  ;;  %5544 = vmatprep.subr.mxu0 %v6142_v7  ;;  %v629_v32 = vld [vmem:[%s7264_s4 + $0x60] sm:$0xff]  ;;  %v639_v36 = vld [vmem:[%s7264_s4 + $0xb0] sm:$0xff]  ;;  %v638_v38 = vld [vmem:[%s7264_s4 + $0xa8] sm:$0xff]  ;;  %s6086_s19 = scalar_lea.vmem %s6085_s1, 32 }
  0x23   : > { %5555 = vmatprep.subr.mxu1 %v6142_v7  ;;  %5545 = vmatpush3.msra.mxu0 %v617_v14  ;;  %v633_v39 = vld [vmem:[%s7264_s4 + $0x80] sm:$0xff]  ;;  %v644_v41 = vld [vmem:[%s7264_s4 + $0xd8] sm:$0xff]  ;;  %v643_v43 = vld [vmem:[%s7264_s4 + $0xd0] sm:$0xff] }
  0x24   : > { %5556 = vmatpush3.msra.mxu1 %v621_v15  ;;  %5546 = vmatprep.mubr.msk.f32.mxu0 %vm6143_vm1, %v6142_v7  ;;  %v5149_v20 = vld [vmem:[%s7294_s25] ss:$0 sm:$0xff]  ;;  %v648_v42 = vld [vmem:[%s7264_s4 + $0xf8] sm:$0xff]  ;;  %v647_v44 = vld [vmem:[%s7264_s4 + $0xf0] sm:$0xff]  ;;  %s7225_s25 = scalar_lea.hbm %s7278_s18, %s5334_s20 }
  0x25   : > { %5557 = vmatprep.mubr.msk.f32.mxu1 %vm6143_vm1, %v6142_v7  ;;  %5560 = vmatprep.subr.mxu0 %v6142_v7  ;;  %v637_v40 = vld [vmem:[%s7264_s4 + $0xa0] sm:$0xff]  ;;  %v642_v45 = vld [vmem:[%s7264_s4 + $0xc8] sm:$0xff]  ;;  %v652_v49 = vld [vmem:[%s7264_s4 + $0x118] sm:$0xff]  ;;  %s583_s29 = scalar_lea.vmem %s7296_s21, %s6290_s24  ;;  %s576_s21 = scalar_lea.vmem [#allocation2], %s575_s23 }
  0x26   : > { %5571 = vmatprep.subr.mxu1 %v6142_v7  ;;  %v646_v46 = vld [vmem:[%s7264_s4 + $0xe8] sm:$0xff]  ;;  %v641_v47 = vld [vmem:[%s7264_s4 + $0xc0] sm:$0xff]  ;;  %v656_v50 = vld [vmem:[%s7264_s4 + $0x138] sm:$0xff] }
  0x27   : > { %v645_v48 = vld [vmem:[%s7264_s4 + $0xe0] sm:$0xff]  ;;  %v651_v51 = vld [vmem:[%s7264_s4 + $0x110] sm:$0xff]  ;;  %v650_v53 = vld [vmem:[%s7264_s4 + $0x108] sm:$0xff] }
  0x28   : > { %v655_v52 = vld [vmem:[%s7264_s4 + $0x130] sm:$0xff]  ;;  %v654_v54 = vld [vmem:[%s7264_s4 + $0x128] sm:$0xff]  ;;  %v649_v55 = vld [vmem:[%s7264_s4 + $0x100] sm:$0xff] }
  0x29   : > { %v653_v56 = vld [vmem:[%s7264_s4 + $0x120] sm:$0xff]  ;;  %v660_v57 = vld [vmem:[%s7264_s4 + $0x158] sm:$0xff]  ;;  %v659_v59 = vld [vmem:[%s7264_s4 + $0x150] sm:$0xff] }
  0x2a   : > { %v664_v58 = vld [vmem:[%s7264_s4 + $0x178] sm:$0xff]  ;;  %v663_v60 = vld [vmem:[%s7264_s4 + $0x170] sm:$0xff]  ;;  %v658_v61 = vld [vmem:[%s7264_s4 + $0x148] sm:$0xff] }
  0x2b   : > { %v662_v62 = vld [vmem:[%s7264_s4 + $0x168] sm:$0xff]  ;;  %v657_v63 = vld [vmem:[%s7264_s4 + $0x140] sm:$0xff] }
  0x2c   : > { %v5155_v10 = vld [vmem:[%s7265_s5 + $0x4] ss:$0 sm:$0xff]  ;;  %v5156_v11 = vld [vmem:[%s7265_s5 + $0x5] ss:$0 sm:$0xff]  ;;  %v5151_v14 = vld [vmem:[%s7265_s5] ss:$0 sm:$0xff] }
  0x2d   : > { %v5152_v15 = vld [vmem:[%s7265_s5 + $0x1] ss:$0 sm:$0xff] }
  0xaa   : > { %v590_v2 = vpop.xlane.xlu0 %589 }
  0xab   : > { %v592_v3 = vmul.f32 0.03125, %v590_v2 }
  0xad   : > { %v593_v4 = vsub.f32 %v584_v0, %v592_v3  ;;  %v661_v0 = vld [vmem:[%s7264_s4 + $0x160] sm:$0xff] }
  0xaf   : > { %v594_v5 = vmul.f32 %v593_v4, %v593_v4 }
  0xb1   : > { %v595_v6 = vsel %vm587_vm0, %v594_v5, 0.0 }
  0xb2   : > { %596 = vadd.xlane.f32.xlu0 %v595_v6 }
 0x13b   : > { %v597_v16 = vpop.xlane.xlu0 %596 }
 0x13c   : > { %v598_v17 = vmul.f32 0.03125, %v597_v16 }
 0x13e   : > { %v599_v18 = vadd.f32 1e-12, %v598_v17 }
 0x140   : > { %6034 = vrsqrt.f32 %v599_v18 }
 0x14d   : > { %v6035_v19 = vpop.eup %6034 }
 0x14e   : > { %v601_v21 = vmul.f32 %v6035_v19, %v593_v4 }
 0x150   : > { %v608_v23 = vmul.f32 %v5149_v20, %v601_v21 }
 0x152   : > { %v6342_v24 = vadd.f32 %v5150_v22, %v608_v23  ;;  %v5157_v22 = vld [vmem:[%s7265_s5 + $0x6] ss:$0 sm:$0xff]  ;;  %v5158_v23 = vld [vmem:[%s7265_s5 + $0x7] ss:$0 sm:$0xff] }
 0x154   : > { %5547 = vmatmul.mubr.msk.f32.vlgmr.msra.gmra.mxu0 %vm587_vm0, %v6342_v24  ;;  %5558 = vmatmul.mubr.msk.f32.vlgmr.msra.gmra.mxu1 %vm587_vm0, %v6342_v24 }
 0x155   : > { %5561 = vmatpush3.msra.mxu0 %v628_v25  ;;  %5572 = vmatpush3.msra.mxu1 %v632_v26 }
 0x156   : > { %5562 = vmatprep.subr.mxu0 %v6142_v7  ;;  %5573 = vmatprep.subr.mxu1 %v6142_v7 }
 0x157   : > { %5563 = vmatpush3.msra.mxu0 %v627_v27  ;;  %5574 = vmatpush3.msra.mxu1 %v631_v28  ;;  %v5153_v27 = vld [vmem:[%s7265_s5 + $0x2] ss:$0 sm:$0xff]  ;;  %v5154_v28 = vld [vmem:[%s7265_s5 + $0x3] ss:$0 sm:$0xff] }
 0x158   : > { %5564 = vmatprep.subr.mxu0 %v6142_v7  ;;  %5575 = vmatprep.subr.mxu1 %v6142_v7 }
 0x159   : > { %5565 = vmatpush3.msra.mxu0 %v626_v29  ;;  %5576 = vmatpush3.msra.mxu1 %v630_v30 }
 0x15a   : > { %5566 = vmatprep.subr.mxu0 %v6142_v7  ;;  %5577 = vmatprep.subr.mxu1 %v6142_v7 }
 0x15b   : > { %5567 = vmatpush3.msra.mxu0 %v625_v31  ;;  %5568 = vmatprep.mubr.msk.f32.mxu0 %vm6143_vm1, %v6142_v7 }
 0x15c   : > { %5578 = vmatpush3.msra.mxu1 %v629_v32  ;;  %5579 = vmatprep.mubr.msk.f32.mxu1 %vm6143_vm1, %v6142_v7 }
 0x15d   : > { %5569 = vmatmul.mubr.msk.f32.vlgmr.msra.gmra.mxu0 %vm587_vm0, %v6342_v24  ;;  %5580 = vmatmul.mubr.msk.f32.vlgmr.msra.gmra.mxu1 %vm587_vm0, %v6342_v24 }
 0x15e   : > { %5582 = vmatprep.subr.mxu0 %v6142_v7  ;;  %5593 = vmatprep.subr.mxu1 %v6142_v7 }
 0x15f   : > { %5583 = vmatpush3.msra.mxu0 %v636_v33  ;;  %5594 = vmatpush3.msra.mxu1 %v640_v34 }
 0x160   : > { %5584 = vmatprep.subr.mxu0 %v6142_v7  ;;  %5595 = vmatprep.subr.mxu1 %v6142_v7 }
 0x161   : > { %5585 = vmatpush3.msra.mxu0 %v635_v35  ;;  %5596 = vmatpush3.msra.mxu1 %v639_v36  ;;  %v5159_v35 = vld [vmem:[%s7265_s5 + $0x8] ss:$0 sm:$0xff]  ;;  %v5160_v36 = vld [vmem:[%s7265_s5 + $0x9] ss:$0 sm:$0xff] }
 0x162   : > { %5586 = vmatprep.subr.mxu0 %v6142_v7  ;;  %5597 = vmatprep.subr.mxu1 %v6142_v7 }
 0x163   : > { %5587 = vmatpush3.msra.mxu0 %v634_v37  ;;  %5598 = vmatpush3.msra.mxu1 %v638_v38 }
 0x164   : > { %5588 = vmatprep.subr.mxu0 %v6142_v7  ;;  %5599 = vmatprep.subr.mxu1 %v6142_v7 }
 0x165   : > { %5589 = vmatpush3.msra.mxu0 %v633_v39  ;;  %5590 = vmatprep.mubr.msk.f32.mxu0 %vm6143_vm1, %v6142_v7 }
 0x166   : > { %5600 = vmatpush3.msra.mxu1 %v637_v40  ;;  %5601 = vmatprep.mubr.msk.f32.mxu1 %vm6143_vm1, %v6142_v7 }
 0x167   : > { %5591 = vmatmul.mubr.msk.f32.vlgmr.msra.gmra.mxu0 %vm587_vm0, %v6342_v24  ;;  %5602 = vmatmul.mubr.msk.f32.vlgmr.msra.gmra.mxu1 %vm587_vm0, %v6342_v24 }
 0x168   : > { %5604 = vmatprep.subr.mxu0 %v6142_v7  ;;  %5615 = vmatprep.subr.mxu1 %v6142_v7 }
 0x169   : > { %5605 = vmatpush3.msra.mxu0 %v644_v41  ;;  %5616 = vmatpush3.msra.mxu1 %v648_v42 }
 0x16a   : > { %5606 = vmatprep.subr.mxu0 %v6142_v7  ;;  %5617 = vmatprep.subr.mxu1 %v6142_v7 }
 0x16b   : > { %5607 = vmatpush3.msra.mxu0 %v643_v43  ;;  %5618 = vmatpush3.msra.mxu1 %v647_v44 }
 0x16c   : > { %5608 = vmatprep.subr.mxu0 %v6142_v7  ;;  %5619 = vmatprep.subr.mxu1 %v6142_v7 }
 0x16d   : > { %5609 = vmatpush3.msra.mxu0 %v642_v45  ;;  %5620 = vmatpush3.msra.mxu1 %v646_v46 }
 0x16e   : > { %5610 = vmatprep.subr.mxu0 %v6142_v7  ;;  %5621 = vmatprep.subr.mxu1 %v6142_v7 }
 0x16f   : > { %5611 = vmatpush3.msra.mxu0 %v641_v47  ;;  %5612 = vmatprep.mubr.msk.f32.mxu0 %vm6143_vm1, %v6142_v7  ;;  %v6612_v47 = vld [vmem:[%s583_s29] ss:$0 sm:$0xff]  ;;  %s5080_s29 = sshll.u32 %s576_s21, 4  ;;  %s5081_s29 = int_to_ptr.vmem [resolvable:$true] %s5080_s29 }
 0x170   : > { %5622 = vmatpush3.msra.mxu1 %v645_v48  ;;  %5623 = vmatprep.mubr.msk.f32.mxu1 %vm6143_vm1, %v6142_v7  ;;  %s6080_s3 = scalar_lea.vmem %s5081_s29, 16  ;;  %p6087_p0 = scmp.lt.s32.totalorder %s5081_s29, %s6085_s1 }
 0x171   : > { %5613 = vmatmul.mubr.msk.f32.vlgmr.msra.gmra.mxu0 %vm587_vm0, %v6342_v24  ;;  %5624 = vmatmul.mubr.msk.f32.vlgmr.msra.gmra.mxu1 %vm587_vm0, %v6342_v24  ;;  %p6081_p11 = scmp.ne.s32.totalorder %s5081_s29, %s6080_s3  ;;  %p6088_p1 = scmp.lt.s32.totalorder %s6086_s19, %s6080_s3 }
 0x172   : > { %5626 = vmatprep.subr.mxu0 %v6142_v7  ;;  %5637 = vmatprep.subr.mxu1 %v6142_v7 }
 0x173   : > { %5627 = vmatpush3.msra.mxu0 %v652_v49  ;;  %5638 = vmatpush3.msra.mxu1 %v656_v50  ;;  %p6082_p12 = pnand %p6081_p11, %p6278_p5  ;;  %p6089_p2 = por %p6088_p1, %p6087_p0 }
 0x174   : > { %5628 = vmatprep.subr.mxu0 %v6142_v7  ;;  %5639 = vmatprep.subr.mxu1 %v6142_v7 }
 0x175   : > { %5629 = vmatpush3.msra.mxu0 %v651_v51  ;;  %5640 = vmatpush3.msra.mxu1 %v655_v52  ;;  %p6083_p13 = pneg %p6082_p12 }
 0x176   : > { %5630 = vmatprep.subr.mxu0 %v6142_v7  ;;  %5641 = vmatprep.subr.mxu1 %v6142_v7 }
 0x177   : > { %5631 = vmatpush3.msra.mxu0 %v650_v53  ;;  %5642 = vmatpush3.msra.mxu1 %v654_v54  ;;  %p6090_p3 = pnand %p6089_p2, %p6083_p13 }
 0x178   : > { %5632 = vmatprep.subr.mxu0 %v6142_v7  ;;  %5643 = vmatprep.subr.mxu1 %v6142_v7 }
 0x179   : > { %5633 = vmatpush3.msra.mxu0 %v649_v55  ;;  %5634 = vmatprep.mubr.msk.f32.mxu0 %vm6143_vm1, %v6142_v7 }
 0x17a   : > { %5644 = vmatpush3.msra.mxu1 %v653_v56  ;;  %5645 = vmatprep.mubr.msk.f32.mxu1 %vm6143_vm1, %v6142_v7 }
 0x17b   : > { %5635 = vmatmul.mubr.msk.f32.vlgmr.msra.gmra.mxu0 %vm587_vm0, %v6342_v24  ;;  %5646 = vmatmul.mubr.msk.f32.vlgmr.msra.gmra.mxu1 %vm587_vm0, %v6342_v24 }
 0x17c   : > { %5648 = vmatprep.subr.mxu0 %v6142_v7  ;;  %5659 = vmatprep.subr.mxu1 %v6142_v7 }
 0x17d   : > { %5649 = vmatpush3.msra.mxu0 %v660_v57  ;;  %5660 = vmatpush3.msra.mxu1 %v664_v58 }
 0x17e   : > { %5650 = vmatprep.subr.mxu0 %v6142_v7  ;;  %5661 = vmatprep.subr.mxu1 %v6142_v7 }
 0x17f   : > { %5651 = vmatpush3.msra.mxu0 %v659_v59  ;;  %5662 = vmatpush3.msra.mxu1 %v663_v60 }
 0x180   : > { %5652 = vmatprep.subr.mxu0 %v6142_v7  ;;  %5663 = vmatprep.subr.mxu1 %v6142_v7 }
 0x181   : > { %5653 = vmatpush3.msra.mxu0 %v658_v61  ;;  %5664 = vmatpush3.msra.mxu1 %v662_v62 }
 0x182   : > { %5654 = vmatprep.subr.mxu0 %v6142_v7  ;;  %5665 = vmatprep.subr.mxu1 %v6142_v7 }
 0x183   : > { %5655 = vmatpush3.msra.mxu0 %v657_v63  ;;  %5656 = vmatprep.mubr.msk.f32.mxu0 %vm6143_vm1, %v6142_v7 }
 0x184   : > { %5666 = vmatpush3.msra.mxu1 %v661_v0  ;;  %5667 = vmatprep.mubr.msk.f32.mxu1 %vm6143_vm1, %v6142_v7 }
 0x185   : > { %5657 = vmatmul.mubr.msk.f32.vlgmr.msra.gmra.mxu0 %vm587_vm0, %v6342_v24  ;;  %5668 = vmatmul.mubr.msk.f32.vlgmr.msra.gmra.mxu1 %vm587_vm0, %v6342_v24 }
 0x186   : > { %5670 = vmatprep.subr.mxu0 %v6142_v7  ;;  %5675 = vmatprep.subr.mxu1 %v6142_v7 }
 0x187   : > { %5672 = vmatprep.mubr.msk.f32.mxu0 %vm6143_vm1, %v6142_v7  ;;  %5677 = vmatprep.mubr.msk.f32.mxu1 %vm6143_vm1, %v6142_v7 }
 0x214   : > { %v818_v1 = vpop.f32.mrf.mxu0  ;;  %v888_v2 = vpop.f32.mrf.mxu1 }
 0x215   : > { %v819_v20 = vadd.f32 %v5151_v14, %v818_v1  ;;  %v889_v21 = vadd.f32 %v5152_v15, %v888_v2 }
 0x216   : > { %v5548_v3 = vpop.f32.mrf.mxu0  ;;  %v5559_v4 = vpop.f32.mrf.mxu1 }
 0x21d   : > { %v958_v5 = vpop.f32.mrf.mxu0  ;;  %v1028_v6 = vpop.f32.mrf.mxu1 }
 0x21e   : > { %v959_v33 = vadd.f32 %v5153_v27, %v958_v5  ;;  %v1029_v34 = vadd.f32 %v5154_v28, %v1028_v6 }
 0x21f   : > { %v5570_v8 = vpop.f32.mrf.mxu0  ;;  %v5581_v9 = vpop.f32.mrf.mxu1 }
 0x227   : > { %v1098_v12 = vpop.f32.mrf.mxu0  ;;  %v1168_v13 = vpop.f32.mrf.mxu1 }
 0x228   : > { %v1099_v16 = vadd.f32 %v5155_v10, %v1098_v12  ;;  %v1169_v17 = vadd.f32 %v5156_v11, %v1168_v13 }
 0x229   : > { %v5592_v18 = vpop.f32.mrf.mxu0  ;;  %v5603_v19 = vpop.f32.mrf.mxu1 }
 0x22a   : > { %5671 = vmatpush3.xpose.msk.msra.mxu0 %vm1592_vm2, %v1099_v16  ;;  %5676 = vmatpush3.xpose.msk.msra.mxu1 %vm1592_vm2, %v1169_v17 }
 0x22b   : > { %5680 = vmatprep.subr.mxu0 %v6142_v7  ;;  %5685 = vmatprep.subr.mxu1 %v6142_v7 }
 0x22d   : > { %5673 = vmatmul.mubr.msk.f32.vlgmr.msra.gmra.mxu0 %vm1592_vm2, %v819_v20  ;;  %5678 = vmatmul.mubr.msk.f32.vlgmr.msra.gmra.mxu1 %vm1592_vm2, %v889_v21 }
 0x22e   : > { %5682 = vmatprep.mubr.msk.f32.mxu0 %vm6143_vm1, %v6142_v7  ;;  %5687 = vmatprep.mubr.msk.f32.mxu1 %vm6143_vm1, %v6142_v7 }
 0x231   : > { %v1238_v25 = vpop.f32.mrf.mxu0  ;;  %v1308_v26 = vpop.f32.mrf.mxu1 }
 0x232   : > { %v1239_v29 = vadd.f32 %v5157_v22, %v1238_v25  ;;  %v1309_v30 = vadd.f32 %v5158_v23, %v1308_v26 }
 0x233   : > { %v5614_v31 = vpop.f32.mrf.mxu0  ;;  %v5625_v32 = vpop.f32.mrf.mxu1 }
 0x234   : > { %5681 = vmatpush3.xpose.msk.msra.mxu0 %vm1592_vm2, %v1239_v29  ;;  %5686 = vmatpush3.xpose.msk.msra.mxu1 %vm1592_vm2, %v1309_v30  ;;  %v5161_v30 = vld [vmem:[%s7265_s5 + $0xa] ss:$0 sm:$0xff] }
 0x235   : > { %5690 = vmatprep.subr.mxu0 %v6142_v7  ;;  %5695 = vmatprep.subr.mxu1 %v6142_v7 }
 0x237   : > { %5683 = vmatmul.mubr.msk.f32.vlgmr.msra.gmra.mxu0 %vm1592_vm2, %v959_v33  ;;  %5688 = vmatmul.mubr.msk.f32.vlgmr.msra.gmra.mxu1 %vm1592_vm2, %v1029_v34  ;;  %v5162_v34 = vld [vmem:[%s7265_s5 + $0xb] ss:$0 sm:$0xff] }
 0x238   : > { %5692 = vmatprep.mubr.msk.f32.mxu0 %vm6143_vm1, %v6142_v7  ;;  %5697 = vmatprep.mubr.msk.f32.mxu1 %vm6143_vm1, %v6142_v7 }
 0x23b   : > { %v1378_v37 = vpop.f32.mrf.mxu0  ;;  %v1448_v38 = vpop.f32.mrf.mxu1 }
 0x23c   : > { %v1379_v39 = vadd.f32 %v5159_v35, %v1378_v37  ;;  %v1449_v40 = vadd.f32 %v5160_v36, %v1448_v38 }
 0x23d   : > { %v5636_v41 = vpop.f32.mrf.mxu0  ;;  %v5647_v42 = vpop.f32.mrf.mxu1 }
 0x23e   : > { %5691 = vmatpush3.msra.mxu0 %v1379_v39  ;;  %5696 = vmatpush3.msra.mxu1 %v1449_v40  ;;  %v2247_v42 = vld [vmem:[%s7266_s6] sm:$0xff] }
 0x23f   : > { %5700 = vmatprep.subr.mxu0 %v6142_v7  ;;  %5705 = vmatprep.subr.mxu1 %v6142_v7 }
 0x245   : > { %v6604_v43 = vpop.f32.mrf.mxu0  ;;  %v6606_v44 = vpop.f32.mrf.mxu1 }
 0x246   : > { %v1519_v33 = vadd.f32 %v5161_v30, %v6604_v43  ;;  %v1589_v37 = vadd.f32 %v5162_v34, %v6606_v44  ;;  %v2248_v43 = vld [vmem:[%s7266_s6 + $0x8] sm:$0xff]  ;;  %v2249_v44 = vld [vmem:[%s7266_s6 + $0x10] sm:$0xff] }
 0x247   : > { %v5658_v45 = vpop.f32.mrf.mxu0  ;;  %v5669_v46 = vpop.f32.mrf.mxu1  ;;  %v2687_v30 = vld [vmem:[%s7272_s12 + $0x30] sm:$0xff] }
 0x248   : > { %v2683_v34 = vld [vmem:[%s7272_s12 + $0x10] sm:$0xff] }
 0x2ed   : > { %v1665_v48 = vpop.f32.mrf.mxu0  ;;  %v1741_v49 = vpop.f32.mrf.mxu1 }
 0x2ee   : > { %v1897_v50 = vmul.f32 0.35355338, %v1665_v48  ;;  %v1898_v51 = vmul.f32 0.35355338, %v1741_v49  ;;  %v2250_v48 = vld [vmem:[%s7266_s6 + $0x18] sm:$0xff] }
 0x2ef   : > { %v5674_v52 = vpop.f32.mrf.mxu0  ;;  %v5679_v53 = vpop.f32.mrf.mxu1 }
 0x2f0   : > { %v1907_v54 = vadd.f32 %v6612_v47, %v1897_v50  ;;  %v1908_v56 = vadd.f32 %v6612_v47, %v1898_v51 }
 0x2f2   : > { %v1911_v55 = vsel %vm1592_vm2, %v1907_v54, -inf  ;;  %v1914_v57 = vsel %vm1592_vm2, %v1908_v56, -inf }
 0x2f3   : > { %1912 = vmax.xlane.f32.xlu1 %v1911_v55 }
 0x2f7   : > { %v1817_v58 = vpop.f32.mrf.mxu0  ;;  %v1893_v59 = vpop.f32.mrf.mxu1  ;;  %1915 = vmax.xlane.f32.xlu1 %v1914_v57 }
 0x2f8   : > { %v1899_v60 = vmul.f32 0.35355338, %v1817_v58  ;;  %v1900_v61 = vmul.f32 0.35355338, %v1893_v59 }
 0x2f9   : > { %v5689_v62 = vpop.f32.mrf.mxu1  ;;  %v5684_v63 = vpop.f32.mrf.mxu0 }
 0x2fa   : > { %v1910_v0 = vadd.f32 %v6612_v47, %v1900_v61  ;;  %v1909_v1 = vadd.f32 %v6612_v47, %v1899_v60 }
 0x2fc   : > { %v1920_v2 = vsel %vm1592_vm2, %v1910_v0, -inf  ;;  %v1917_v3 = vsel %vm1592_vm2, %v1909_v1, -inf }
 0x2fd   : > { %1921 = vmax.xlane.f32.xlu1 %v1920_v2  ;;  %1918 = vmax.xlane.f32.xlu0 %v1917_v3 }
 0x37c   : > { %v1913_v4 = vpop.xlane.xlu1 %1912 }
 0x37d   : > { %v1923_v5 = vsub.f32 %v1907_v54, %v1913_v4 }
 0x37f   : > { %v1927_v6 = vmul.f32 1.442695, %v1923_v5  ;;  %v5192_v5 = vld [vmem:[%s7267_s7] ss:$0 sm:$0xff] }
 0x380   : > { %v1916_v8 = vpop.xlane.xlu1 %1915 }
 0x381   : > { %6036 = vpow2.f32 %v1927_v6  ;;  %v1924_v9 = vsub.f32 %v1908_v56, %v1916_v8 }
 0x383   : > { %v1929_v10 = vmul.f32 1.442695, %v1924_v9 }
 0x385   : > { %6038 = vpow2.f32 %v1929_v10 }
 0x386   : > { %v1922_v11 = vpop.xlane.xlu1 %1921  ;;  %v1919_v12 = vpop.xlane.xlu0 %1918 }
 0x387   : > { %v1926_v13 = vsub.f32 %v1910_v0, %v1922_v11  ;;  %v1925_v14 = vsub.f32 %v1909_v1, %v1919_v12 }
 0x389   : > { %v1933_v15 = vmul.f32 1.442695, %v1926_v13  ;;  %v1931_v16 = vmul.f32 1.442695, %v1925_v14 }
 0x38b   : > { %6040 = vpow2.f32 %v1933_v15 }
 0x38c   : > { %6042 = vpow2.f32 %v1931_v16  ;;  %v2591_v16 = vld [vmem:[%s7270_s10 + $0x18] sm:$0xff] }
 0x38e   : > { %v6037_v17 = vpop.eup %6036 }
 0x38f   : > { %v1935_v18 = vsel %vm1592_vm2, %v6037_v17, 0.0 }
 0x390   : > { %1936 = vadd.xlane.f32.xlu0 %v1935_v18  ;;  %v2588_v18 = vld [vmem:[%s7270_s10] sm:$0xff] }
 0x392   : > { %v6039_v19 = vpop.eup %6038 }
 0x393   : > { %v1938_v20 = vsel %vm1592_vm2, %v6039_v19, 0.0 }
 0x394   : > { %1939 = vadd.xlane.f32.xlu1 %v1938_v20 }
 0x398   : > { %v6041_v21 = vpop.eup %6040 }
 0x399   : > { %v6043_v22 = vpop.eup %6042  ;;  %v1944_v23 = vsel %vm1592_vm2, %v6041_v21, 0.0 }
 0x39a   : > { %1945 = vadd.xlane.f32.xlu1 %v1944_v23  ;;  %v1941_v25 = vsel %vm1592_vm2, %v6043_v22, 0.0  ;;  %v5193_v23 = vld [vmem:[%s7268_s8] ss:$0 sm:$0xff] }
 0x39b   : > { %1942 = vadd.xlane.f32.xlu0 %v1941_v25 }
 0x419   : > { %v1937_v26 = vpop.xlane.xlu0 %1936 }
 0x41a   : > { %6044 = vrcp.f32 %v1937_v26  ;;  %v5194_v26 = vld [vmem:[%s7269_s9] ss:$0 sm:$0xff] }
 0x41d   : > { %v1940_v27 = vpop.xlane.xlu1 %1939 }
 0x41e   : > { %6046 = vrcp.f32 %v1940_v27 }
 0x423   : > { %v1946_v28 = vpop.xlane.xlu1 %1945 }
 0x424   : > { %6048 = vrcp.f32 %v1946_v28  ;;  %v1943_v29 = vpop.xlane.xlu0 %1942 }
 0x425   : > { %6050 = vrcp.f32 %v1943_v29  ;;  %v2688_v29 = vld [vmem:[%s7272_s12 + $0x38] sm:$0xff] }
 0x427   : > { %v6045_v31 = vpop.eup %6044 }
 0x428   : > { %v1951_v32 = vmul.f32 %v6045_v31, %v6037_v17  ;;  %v2590_v17 = vld [vmem:[%s7270_s10 + $0x10] sm:$0xff]  ;;  %v2686_v31 = vld [vmem:[%s7272_s12 + $0x28] sm:$0xff] }
 0x42a   : > { %5693 = vmatmul.mubr.msk.f32.vlgmr.msra.gmra.mxu0 %vm1592_vm2, %v1951_v32  ;;  %v2685_v32 = vld [vmem:[%s7272_s12 + $0x20] sm:$0xff] }
 0x42b   : > { %v6047_v35 = vpop.eup %6046  ;;  %5701 = vmatpush3.msra.mxu0 %v1519_v33  ;;  %5702 = vmatprep.mubr.msk.f32.mxu0 %vm6143_vm1, %v6142_v7  ;;  %v2684_v33 = vld [vmem:[%s7272_s12 + $0x18] sm:$0xff] }
 0x42c   : > { %v1952_v36 = vmul.f32 %v6047_v35, %v6039_v19  ;;  %5710 = vmatprep.subr.mxu0 %v6142_v7  ;;  %v2682_v35 = vld [vmem:[%s7272_s12 + $0x8] sm:$0xff] }
 0x42e   : > { %5698 = vmatmul.mubr.msk.f32.vlgmr.msra.gmra.mxu1 %vm1592_vm2, %v1952_v36  ;;  %v2681_v36 = vld [vmem:[%s7272_s12] sm:$0xff] }
 0x42f   : > { %5706 = vmatpush3.msra.mxu1 %v1589_v37  ;;  %5707 = vmatprep.mubr.msk.f32.mxu1 %vm6143_vm1, %v6142_v7  ;;  %v5195_v37 = vld [vmem:[%s7271_s11] ss:$0 sm:$0xff] }
 0x430   : > { %5715 = vmatprep.subr.mxu1 %v6142_v7 }
 0x431   : > { %v6049_v38 = vpop.eup %6048 }
 0x432   : > { %v6051_v39 = vpop.eup %6050  ;;  %v1954_v40 = vmul.f32 %v6049_v38, %v6041_v21 }
 0x433   : > { %v1953_v41 = vmul.f32 %v6051_v39, %v6043_v22 }
 0x434   : > { %5708 = vmatmul.mubr.msk.f32.vlgmr.msra.gmra.mxu1 %vm1592_vm2, %v1954_v40 }
 0x435   : > { %5703 = vmatmul.mubr.msk.f32.vlgmr.msra.gmra.mxu0 %vm1592_vm2, %v1953_v41  ;;  %5717 = vmatprep.mubr.msk.f32.mxu1 %vm6143_vm1, %v6142_v7 }
 0x436   : > { %5712 = vmatprep.mubr.msk.f32.mxu0 %vm6143_vm1, %v6142_v7  ;;  %5711 = vmatpush3.msra.mxu0 %v2247_v42 }
 0x437   : > { %5720 = vmatprep.subr.mxu0 %v6142_v7  ;;  %5716 = vmatpush3.msra.mxu1 %v2248_v43 }
 0x438   : > { %5725 = vmatprep.subr.mxu1 %v6142_v7 }
 0x4ea   : > { %v2024_v45 = vpop.f32.mrf.mxu0 }
 0x4eb   : > { %5713 = vmatmul.mubr.msk.f32.vlgmr.msra.gmra.mxu0 %vm1592_vm2, %v2024_v45 }
 0x4ec   : > { %v5694_v46 = vpop.f32.mrf.mxu0  ;;  %5721 = vmatpush3.msra.mxu0 %v2249_v44  ;;  %5722 = vmatprep.mubr.msk.f32.mxu0 %vm6143_vm1, %v6142_v7 }
 0x4ed   : > { %5730 = vmatprep.subr.mxu0 %v6142_v7 }
 0x4ee   : > { %v2097_v49 = vpop.f32.mrf.mxu1 }
 0x4ef   : > { %5718 = vmatmul.mubr.msk.f32.vlgmr.msra.gmra.mxu1 %vm1592_vm2, %v2097_v49 }
 0x4f0   : > { %v5699_v50 = vpop.f32.mrf.mxu1  ;;  %5726 = vmatpush3.msra.mxu1 %v2250_v48  ;;  %5727 = vmatprep.mubr.msk.f32.mxu1 %vm6143_vm1, %v6142_v7 }
 0x4f1   : > { %5741 = vmatprep.subr.mxu1 %v6142_v7 }
 0x4f4   : > { %v2243_v51 = vpop.f32.mrf.mxu1 }
 0x4f5   : > { %v2170_v52 = vpop.f32.mrf.mxu0  ;;  %5728 = vmatmul.mubr.msk.f32.vlgmr.msra.gmra.mxu1 %vm1592_vm2, %v2243_v51  ;;  %v5197_v51 = vld [vmem:[%s7273_s13] ss:$0 sm:$0xff] }
 0x4f6   : > { %5723 = vmatmul.mubr.msk.f32.vlgmr.msra.gmra.mxu0 %vm1592_vm2, %v2170_v52  ;;  %v5709_v53 = vpop.f32.mrf.mxu1  ;;  %5757 = vmatprep.mubr.msk.f32.mxu1 %vm6143_vm1, %v6142_v7 }
 0x4f7   : > { %v5704_v54 = vpop.f32.mrf.mxu0  ;;  %5738 = vmatprep.mubr.msk.f32.mxu0 %vm6143_vm1, %v6142_v7  ;;  %5731 = vmatpush3.msra.mxu0 %v2591_v16  ;;  %v5208_v16 = vld [vmem:[%s7264_s4 + $0x1b8] sm:$0xff] }
 0x4f8   : > { %5732 = vmatprep.subr.mxu0 %v6142_v7  ;;  %5742 = vmatpush3.msra.mxu1 %v2688_v29  ;;  %v5226_v29 = vld [vmem:[%s7264_s4 + $0x248] sm:$0xff] }
 0x4f9   : > { %5733 = vmatpush3.msra.mxu0 %v2590_v17  ;;  %5743 = vmatprep.subr.mxu1 %v6142_v7  ;;  %v5220_v17 = vld [vmem:[%s7264_s4 + $0x218] sm:$0xff] }
 0x4fa   : > { %5734 = vmatprep.subr.mxu0 %v6142_v7  ;;  %5744 = vmatpush3.msra.mxu1 %v2687_v30  ;;  %v5213_v30 = vld [vmem:[%s7264_s4 + $0x1e0] sm:$0xff] }
 0x4fb   : > { %5745 = vmatprep.subr.mxu1 %v6142_v7 }
 0x4fc   : > { %5746 = vmatpush3.msra.mxu1 %v2686_v31  ;;  %v5225_v31 = vld [vmem:[%s7264_s4 + $0x240] sm:$0xff] }
 0x4fd   : > { %5747 = vmatprep.subr.mxu1 %v6142_v7 }
 0x4fe   : > { %5748 = vmatpush3.msra.mxu1 %v2685_v32  ;;  %v5224_v32 = vld [vmem:[%s7264_s4 + $0x238] sm:$0xff] }
 0x4ff   : > { %5749 = vmatprep.subr.mxu1 %v6142_v7 }
 0x500   : > { %5750 = vmatpush3.msra.mxu1 %v2684_v33  ;;  %v5236_v33 = vld [vmem:[%s7264_s4 + $0x298] sm:$0xff] }
 0x501   : > { %5751 = vmatprep.subr.mxu1 %v6142_v7 }
 0x502   : > { %5752 = vmatpush3.msra.mxu1 %v2683_v34  ;;  %v5223_v34 = vld [vmem:[%s7264_s4 + $0x230] sm:$0xff] }
 0x503   : > { %5753 = vmatprep.subr.mxu1 %v6142_v7 }
 0x504   : > { %5754 = vmatpush3.msra.mxu1 %v2682_v35  ;;  %v5235_v35 = vld [vmem:[%s7264_s4 + $0x290] sm:$0xff] }
 0x505   : > { %5755 = vmatprep.subr.mxu1 %v6142_v7 }
 0x506   : > { %5756 = vmatpush3.msra.mxu1 %v2681_v36  ;;  %v5222_v36 = vld [vmem:[%s7264_s4 + $0x228] sm:$0xff] }
 0x507   : > { %5782 = vmatprep.subr.mxu1 %v6142_v7 }
 0x5ab   : > { %v2320_v55 = vpop.f32.mrf.mxu0 }
 0x5ac   : > { %v2543_v60 = vsel %vm587_vm0, %v2320_v55, 0.0 }
 0x5ad   : > { %v5714_v56 = vpop.f32.mrf.mxu0 }
 0x5af   : > { %v2393_v57 = vpop.f32.mrf.mxu1 }
 0x5b0   : > { %v2544_v59 = vsel %vm587_vm0, %v2393_v57, 0.0 }
 0x5b1   : > { %v5719_v58 = vpop.f32.mrf.mxu1  ;;  %v2545_v62 = vadd.f32 %v2544_v59, %v2543_v60 }
 0x5b5   : > { %v2539_v61 = vpop.f32.mrf.mxu1 }
 0x5b6   : > { %v2466_v63 = vpop.f32.mrf.mxu0  ;;  %v2548_v4 = vsel %vm587_vm0, %v2539_v61, 0.0 }
 0x5b7   : > { %v2546_v0 = vsel %vm587_vm0, %v2466_v63, 0.0  ;;  %v5729_v1 = vpop.f32.mrf.mxu1  ;;  %v5212_v63 = vld [vmem:[%s7264_s4 + $0x1d8] sm:$0xff] }
 0x5b8   : > { %v2547_v2 = vadd.f32 %v2546_v0, %v2545_v62  ;;  %v5724_v3 = vpop.f32.mrf.mxu0  ;;  %v5204_v62 = vld [vmem:[%s7264_s4 + $0x198] sm:$0xff]  ;;  %v5203_v0 = vld [vmem:[%s7264_s4 + $0x190] sm:$0xff] }
 0x5b9   : > { %v5211_v1 = vld [vmem:[%s7264_s4 + $0x1d0] sm:$0xff]  ;;  %v5210_v3 = vld [vmem:[%s7264_s4 + $0x1c8] sm:$0xff] }
 0x5ba   : > { %v2549_v6 = vadd.f32 %v2548_v4, %v2547_v2  ;;  %v5202_v2 = vld [vmem:[%s7264_s4 + $0x188] sm:$0xff]  ;;  %v5201_v4 = vld [vmem:[%s7264_s4 + $0x180] sm:$0xff] }
 0x5bc   : > { %v2557_v8 = vadd.f32 %v5192_v5, %v2549_v6  ;;  %v5209_v5 = vld [vmem:[%s7264_s4 + $0x1c0] sm:$0xff] }
 0x5be   : > { %v2558_v9 = vadd.f32 %v2557_v8, %v6342_v24  ;;  %v2589_v24 = vld [vmem:[%s7270_s10 + $0x8] sm:$0xff] }
 0x5bf   : > { %5735 = vmatpush3.msra.mxu0 %v2589_v24  ;;  %v5207_v24 = vld [vmem:[%s7264_s4 + $0x1b0] sm:$0xff] }
 0x5c0   : > { %v2561_v10 = vsel %vm587_vm0, %v2558_v9, 0.0  ;;  %5736 = vmatprep.subr.mxu0 %v6142_v7 }
 0x5c1   : > { %2562 = vadd.xlane.f32.xlu0 %v2561_v10  ;;  %5737 = vmatpush3.msra.mxu0 %v2588_v18  ;;  %v5219_v18 = vld [vmem:[%s7264_s4 + $0x210] sm:$0xff] }
 0x5c2   : > { %5760 = vmatprep.subr.mxu0 %v6142_v7 }
 0x64a   : > { %v2563_v11 = vpop.xlane.xlu0 %2562 }
 0x64b   : > { %v2564_v12 = vmul.f32 0.03125, %v2563_v11  ;;  %v5199_v11 = vld [vmem:[%s7274_s14] ss:$0 sm:$0xff] }
 0x64d   : > { %v2565_v13 = vsub.f32 %v2558_v9, %v2564_v12 }
 0x64f   : > { %v2566_v14 = vmul.f32 %v2565_v13, %v2565_v13 }
 0x651   : > { %v2567_v15 = vsel %vm587_vm0, %v2566_v14, 0.0 }
 0x652   : > { %2568 = vadd.xlane.f32.xlu1 %v2567_v15 }
 0x6db   : > { %v2569_v19 = vpop.xlane.xlu1 %2568 }
 0x6dc   : > { %v2570_v20 = vmul.f32 0.03125, %v2569_v19  ;;  %v5206_v19 = vld [vmem:[%s7264_s4 + $0x1a8] sm:$0xff] }
 0x6de   : > { %v2571_v21 = vadd.f32 1e-12, %v2570_v20  ;;  %v5218_v20 = vld [vmem:[%s7264_s4 + $0x208] sm:$0xff] }
 0x6e0   : > { %6052 = vrsqrt.f32 %v2571_v21  ;;  %v5205_v21 = vld [vmem:[%s7264_s4 + $0x1a0] sm:$0xff] }
 0x6ed   : > { %v6053_v22 = vpop.eup %6052 }
 0x6ee   : > { %v2573_v25 = vmul.f32 %v6053_v22, %v2565_v13  ;;  %v5200_v13 = vld [vmem:[%s7275_s15] ss:$0 sm:$0xff] }
 0x6ef   : > { %v5217_v22 = vld [vmem:[%s7264_s4 + $0x200] sm:$0xff] }
 0x6f0   : > { %v2580_v27 = vmul.f32 %v5193_v23, %v2573_v25  ;;  %v5216_v23 = vld [vmem:[%s7264_s4 + $0x1f8] sm:$0xff] }
 0x6f1   : > { %v5228_v25 = vld [vmem:[%s7264_s4 + $0x258] sm:$0xff] }
 0x6f2   : > { %v2587_v28 = vadd.f32 %v5194_v26, %v2580_v27  ;;  %v5215_v26 = vld [vmem:[%s7264_s4 + $0x1f0] sm:$0xff] }
 0x6f3   : > { %v5227_v27 = vld [vmem:[%s7264_s4 + $0x250] sm:$0xff] }
 0x6f4   : > { %5739 = vmatmul.mubr.msk.f32.vlgmr.msra.gmra.mxu0 %vm587_vm0, %v2587_v28 }
 0x6f5   : > { %5768 = vmatprep.mubr.msk.f32.mxu0 %vm6143_vm1, %v6142_v7  ;;  %5761 = vmatpush3.msra.mxu0 %v5204_v62 }
 0x6f6   : > { %5762 = vmatprep.subr.mxu0 %v6142_v7 }
 0x6f7   : > { %5763 = vmatpush3.msra.mxu0 %v5203_v0  ;;  %v5261_v0 = vld [vmem:[%s7265_s5 + $0xc] ss:$0 sm:$0xff] }
 0x6f8   : > { %5764 = vmatprep.subr.mxu0 %v6142_v7 }
 0x6f9   : > { %5765 = vmatpush3.msra.mxu0 %v5202_v2 }
 0x6fa   : > { %5766 = vmatprep.subr.mxu0 %v6142_v7 }
 0x6fb   : > { %5767 = vmatpush3.msra.mxu0 %v5201_v4 }
 0x6fc   : > { %5771 = vmatprep.subr.mxu0 %v6142_v7 }
 0x7b4   : > { %v2668_v38 = vpop.f32.mrf.mxu0 }
 0x7b5   : > { %v2669_v39 = vadd.f32 %v5195_v37, %v2668_v38  ;;  %v5234_v37 = vld [vmem:[%s7264_s4 + $0x288] sm:$0xff]  ;;  %v5221_v38 = vld [vmem:[%s7264_s4 + $0x220] sm:$0xff] }
 0x7b6   : > { %v5740_v40 = vpop.f32.mrf.mxu0 }
 0x7b7   : > { %v2673_v41 = vmul.f32 0.044715, %v2669_v39  ;;  %v2672_v48 = vmul.f32 0.5, %v2669_v39  ;;  %v5232_v40 = vld [vmem:[%s7264_s4 + $0x278] sm:$0xff] }
 0x7b9   : > { %v2674_v42 = vmul.f32 %v2673_v41, %v2669_v39  ;;  %v5244_v41 = vld [vmem:[%s7264_s4 + $0x2d8] sm:$0xff] }
 0x7bb   : > { %v2675_v43 = vmul.f32 %v2674_v42, %v2669_v39  ;;  %v5231_v42 = vld [vmem:[%s7264_s4 + $0x270] sm:$0xff] }
 0x7bd   : > { %v2676_v44 = vadd.f32 %v2675_v43, %v2669_v39  ;;  %v5233_v39 = vld [vmem:[%s7264_s4 + $0x280] sm:$0xff]  ;;  %v5243_v43 = vld [vmem:[%s7264_s4 + $0x2d0] sm:$0xff] }
 0x7bf   : > { %v2677_v45 = vmul.f32 0.7978846, %v2676_v44  ;;  %v5230_v44 = vld [vmem:[%s7264_s4 + $0x268] sm:$0xff] }
 0x7c1   : > { %6054 = vtanh.f32 %v2677_v45  ;;  %v5242_v45 = vld [vmem:[%s7264_s4 + $0x2c8] sm:$0xff] }
 0x7ce   : > { %v6055_v46 = vpop.eup %6054 }
 0x7cf   : > { %v2679_v49 = vadd.f32 1.0, %v6055_v46  ;;  %v5229_v46 = vld [vmem:[%s7264_s4 + $0x260] sm:$0xff] }
 0x7d1   : > { %v2680_v50 = vmul.f32 %v2679_v49, %v2672_v48  ;;  %v5241_v48 = vld [vmem:[%s7264_s4 + $0x2c0] sm:$0xff]  ;;  %v5240_v49 = vld [vmem:[%s7264_s4 + $0x2b8] sm:$0xff] }
 0x7d3   : > { %5758 = vmatmul.mubr.msk.f32.vlgmr.msra.gmra.mxu1 %vm2696_vm3, %v2680_v50  ;;  %v5239_v50 = vld [vmem:[%s7264_s4 + $0x2b0] sm:$0xff] }
 0x7d4   : > { %5790 = vmatprep.mubr.msk.f32.mxu1 %vm6143_vm1, %v6142_v7  ;;  %5783 = vmatpush3.msra.mxu1 %v5212_v63 }
 0x7d5   : > { %5784 = vmatprep.subr.mxu1 %v6142_v7 }
 0x7d6   : > { %5785 = vmatpush3.msra.mxu1 %v5211_v1 }
 0x7d7   : > { %5786 = vmatprep.subr.mxu1 %v6142_v7 }
 0x7d8   : > { %5787 = vmatpush3.msra.mxu1 %v5210_v3 }
 0x7d9   : > { %5788 = vmatprep.subr.mxu1 %v6142_v7 }
 0x7da   : > { %5789 = vmatpush3.msra.mxu1 %v5209_v5  ;;  %v5267_v5 = vld [vmem:[%s7265_s5 + $0x12] ss:$0 sm:$0xff] }
 0x7db   : > { %5804 = vmatprep.subr.mxu1 %v6142_v7 }
 0x893   : > { %v2766_v52 = vpop.f32.mrf.mxu1 }
 0x894   : > { %v2767_v53 = vadd.f32 %v5197_v51, %v2766_v52  ;;  %v5238_v51 = vld [vmem:[%s7264_s4 + $0x2a8] sm:$0xff]  ;;  %v5237_v52 = vld [vmem:[%s7264_s4 + $0x2a0] sm:$0xff] }
 0x895   : > { %v5759_v54 = vpop.f32.mrf.mxu1 }
 0x896   : > { %v2770_v55 = vadd.f32 %v2767_v53, %v2587_v28  ;;  %v5214_v28 = vld [vmem:[%s7264_s4 + $0x1e8] sm:$0xff]  ;;  %v5248_v53 = vld [vmem:[%s7264_s4 + $0x2f8] sm:$0xff]  ;;  %v5247_v54 = vld [vmem:[%s7264_s4 + $0x2f0] sm:$0xff] }
 0x898   : > { %v2773_v56 = vsel %vm587_vm0, %v2770_v55, 0.0 }
 0x899   : > { %2774 = vadd.xlane.f32.xlu0 %v2773_v56  ;;  %v5245_v56 = vld [vmem:[%s7264_s4 + $0x2e0] sm:$0xff] }
 0x922   : > { %v2775_v57 = vpop.xlane.xlu0 %2774 }
 0x923   : > { %v2776_v58 = vmul.f32 0.03125, %v2775_v57 }
 0x925   : > { %v2777_v59 = vsub.f32 %v2770_v55, %v2776_v58  ;;  %v5246_v55 = vld [vmem:[%s7264_s4 + $0x2e8] sm:$0xff] }
 0x927   : > { %v2778_v60 = vmul.f32 %v2777_v59, %v2777_v59 }
 0x929   : > { %v2779_v61 = vsel %vm587_vm0, %v2778_v60, 0.0 }
 0x92a   : > { %2780 = vadd.xlane.f32.xlu1 %v2779_v61  ;;  %v5265_v61 = vld [vmem:[%s7265_s5 + $0x10] ss:$0 sm:$0xff] }
 0x9b3   : > { %v2781_v6 = vpop.xlane.xlu1 %2780 }
 0x9b4   : > { %v2782_v8 = vmul.f32 0.03125, %v2781_v6 }
 0x9b6   : > { %v2783_v9 = vadd.f32 1e-12, %v2782_v8 }
 0x9b8   : > { %6056 = vrsqrt.f32 %v2783_v9  ;;  %v5263_v9 = vld [vmem:[%s7265_s5 + $0xe] ss:$0 sm:$0xff] }
 0x9c5   : > { %v6057_v10 = vpop.eup %6056 }
 0x9c6   : > { %v2785_v12 = vmul.f32 %v6057_v10, %v2777_v59 }
 0x9c8   : > { %v2792_v14 = vmul.f32 %v5199_v11, %v2785_v12 }
 0x9ca   : > { %v6792_v15 = vadd.f32 %v5200_v13, %v2792_v14  ;;  %v5266_v14 = vld [vmem:[%s7265_s5 + $0x11] ss:$0 sm:$0xff] }
 0x9cc   : > { %5769 = vmatmul.mubr.msk.f32.vlgmr.msra.gmra.mxu0 %vm587_vm0, %v6792_v15  ;;  %5791 = vmatmul.mubr.msk.f32.vlgmr.msra.gmra.mxu1 %vm587_vm0, %v6792_v15 }
 0x9cd   : > { %5772 = vmatpush3.msra.mxu0 %v5208_v16  ;;  %5805 = vmatpush3.msra.mxu1 %v5220_v17  ;;  %v5269_v16 = vld [vmem:[%s7265_s5 + $0x14] ss:$0 sm:$0xff] }
 0x9ce   : > { %5773 = vmatprep.subr.mxu0 %v6142_v7  ;;  %5806 = vmatprep.subr.mxu1 %v6142_v7 }
 0x9cf   : > { %5774 = vmatpush3.msra.mxu0 %v5207_v24  ;;  %5807 = vmatpush3.msra.mxu1 %v5219_v18  ;;  %v5262_v24 = vld [vmem:[%s7265_s5 + $0xd] ss:$0 sm:$0xff] }
 0x9d0   : > { %5775 = vmatprep.subr.mxu0 %v6142_v7  ;;  %5808 = vmatprep.subr.mxu1 %v6142_v7 }
 0x9d1   : > { %5776 = vmatpush3.msra.mxu0 %v5206_v19  ;;  %5809 = vmatpush3.msra.mxu1 %v5218_v20 }
 0x9d2   : > { %5777 = vmatprep.subr.mxu0 %v6142_v7  ;;  %5810 = vmatprep.subr.mxu1 %v6142_v7 }
 0x9d3   : > { %5778 = vmatpush3.msra.mxu0 %v5205_v21  ;;  %5779 = vmatprep.mubr.msk.f32.mxu0 %vm6143_vm1, %v6142_v7 }
 0x9d4   : > { %5811 = vmatpush3.msra.mxu1 %v5217_v22  ;;  %5812 = vmatprep.mubr.msk.f32.mxu1 %vm6143_vm1, %v6142_v7 }
 0x9d5   : > { %5780 = vmatmul.mubr.msk.f32.vlgmr.msra.gmra.mxu0 %vm587_vm0, %v6792_v15  ;;  %5793 = vmatprep.subr.mxu0 %v6142_v7 }
 0x9d6   : > { %5813 = vmatmul.mubr.msk.f32.vlgmr.msra.gmra.mxu1 %vm587_vm0, %v6792_v15  ;;  %5826 = vmatprep.subr.mxu1 %v6142_v7 }
 0x9d7   : > { %5794 = vmatpush3.msra.mxu0 %v5216_v23  ;;  %5827 = vmatpush3.msra.mxu1 %v5228_v25  ;;  %v5268_v25 = vld [vmem:[%s7265_s5 + $0x13] ss:$0 sm:$0xff] }
 0x9d8   : > { %5795 = vmatprep.subr.mxu0 %v6142_v7  ;;  %5828 = vmatprep.subr.mxu1 %v6142_v7 }
 0x9d9   : > { %5796 = vmatpush3.msra.mxu0 %v5215_v26  ;;  %5829 = vmatpush3.msra.mxu1 %v5227_v27  ;;  %v5264_v27 = vld [vmem:[%s7265_s5 + $0xf] ss:$0 sm:$0xff] }
 0x9da   : > { %5797 = vmatprep.subr.mxu0 %v6142_v7  ;;  %5830 = vmatprep.subr.mxu1 %v6142_v7 }
 0x9db   : > { %5798 = vmatpush3.msra.mxu0 %v5214_v28  ;;  %5831 = vmatpush3.msra.mxu1 %v5226_v29 }
 0x9dc   : > { %5799 = vmatprep.subr.mxu0 %v6142_v7  ;;  %5832 = vmatprep.subr.mxu1 %v6142_v7 }
 0x9dd   : > { %5800 = vmatpush3.msra.mxu0 %v5213_v30  ;;  %5801 = vmatprep.mubr.msk.f32.mxu0 %vm6143_vm1, %v6142_v7 }
 0x9de   : > { %5833 = vmatpush3.msra.mxu1 %v5225_v31  ;;  %5834 = vmatprep.mubr.msk.f32.mxu1 %vm6143_vm1, %v6142_v7 }
 0x9df   : > { %5802 = vmatmul.mubr.msk.f32.vlgmr.msra.gmra.mxu0 %vm587_vm0, %v6792_v15  ;;  %5815 = vmatprep.subr.mxu0 %v6142_v7 }
 0x9e0   : > { %5835 = vmatmul.mubr.msk.f32.vlgmr.msra.gmra.mxu1 %vm587_vm0, %v6792_v15  ;;  %5848 = vmatprep.subr.mxu1 %v6142_v7 }
 0x9e1   : > { %5816 = vmatpush3.msra.mxu0 %v5224_v32  ;;  %5849 = vmatpush3.msra.mxu1 %v5236_v33  ;;  %v5270_v33 = vld [vmem:[%s7265_s5 + $0x15] ss:$0 sm:$0xff] }
 0x9e2   : > { %5817 = vmatprep.subr.mxu0 %v6142_v7  ;;  %5850 = vmatprep.subr.mxu1 %v6142_v7 }
 0x9e3   : > { %5818 = vmatpush3.msra.mxu0 %v5223_v34  ;;  %5851 = vmatpush3.msra.mxu1 %v5235_v35 }
 0x9e4   : > { %5819 = vmatprep.subr.mxu0 %v6142_v7  ;;  %5852 = vmatprep.subr.mxu1 %v6142_v7 }
 0x9e5   : > { %5820 = vmatpush3.msra.mxu0 %v5222_v36  ;;  %5853 = vmatpush3.msra.mxu1 %v5234_v37 }
 0x9e6   : > { %5821 = vmatprep.subr.mxu0 %v6142_v7  ;;  %5854 = vmatprep.subr.mxu1 %v6142_v7 }
 0x9e7   : > { %5822 = vmatpush3.msra.mxu0 %v5221_v38  ;;  %5823 = vmatprep.mubr.msk.f32.mxu0 %vm6143_vm1, %v6142_v7 }
 0x9e8   : > { %5855 = vmatpush3.msra.mxu1 %v5233_v39  ;;  %5856 = vmatprep.mubr.msk.f32.mxu1 %vm6143_vm1, %v6142_v7 }
 0x9e9   : > { %5824 = vmatmul.mubr.msk.f32.vlgmr.msra.gmra.mxu0 %vm587_vm0, %v6792_v15  ;;  %5837 = vmatprep.subr.mxu0 %v6142_v7 }
 0x9ea   : > { %5857 = vmatmul.mubr.msk.f32.vlgmr.msra.gmra.mxu1 %vm587_vm0, %v6792_v15  ;;  %5870 = vmatprep.subr.mxu1 %v6142_v7 }
 0x9eb   : > { %5838 = vmatpush3.msra.mxu0 %v5232_v40  ;;  %5871 = vmatpush3.msra.mxu1 %v5244_v41 }
 0x9ec   : > { %5839 = vmatprep.subr.mxu0 %v6142_v7  ;;  %5872 = vmatprep.subr.mxu1 %v6142_v7 }
 0x9ed   : > { %5840 = vmatpush3.msra.mxu0 %v5231_v42  ;;  %5873 = vmatpush3.msra.mxu1 %v5243_v43 }
 0x9ee   : > { %5841 = vmatprep.subr.mxu0 %v6142_v7  ;;  %5874 = vmatprep.subr.mxu1 %v6142_v7 }
 0x9ef   : > { %5842 = vmatpush3.msra.mxu0 %v5230_v44  ;;  %5875 = vmatpush3.msra.mxu1 %v5242_v45 }
 0x9f0   : > { %5843 = vmatprep.subr.mxu0 %v6142_v7  ;;  %5876 = vmatprep.subr.mxu1 %v6142_v7 }
 0x9f1   : > { %5844 = vmatpush3.msra.mxu0 %v5229_v46  ;;  %5845 = vmatprep.mubr.msk.f32.mxu0 %vm6143_vm1, %v6142_v7 }
 0x9f2   : > { %5877 = vmatpush3.msra.mxu1 %v5241_v48  ;;  %5878 = vmatprep.mubr.msk.f32.mxu1 %vm6143_vm1, %v6142_v7 }
 0x9f3   : > { %5846 = vmatmul.mubr.msk.f32.vlgmr.msra.gmra.mxu0 %vm587_vm0, %v6792_v15  ;;  %5859 = vmatprep.subr.mxu0 %v6142_v7 }
 0x9f4   : > { %5879 = vmatmul.mubr.msk.f32.vlgmr.msra.gmra.mxu1 %vm587_vm0, %v6792_v15  ;;  %5860 = vmatpush3.msra.mxu0 %v5240_v49 }
 0x9f5   : > { %5861 = vmatprep.subr.mxu0 %v6142_v7  ;;  %5867 = vmatprep.mubr.msk.f32.mxu0 %vm6143_vm1, %v6142_v7 }
 0x9f6   : > { %5862 = vmatpush3.msra.mxu0 %v5239_v50  ;;  %5892 = vmatprep.subr.mxu1 %v6142_v7 }
 0x9f7   : > { %5863 = vmatprep.subr.mxu0 %v6142_v7  ;;  %5894 = vmatprep.mubr.msk.f32.mxu1 %vm6143_vm1, %v6142_v7 }
 0x9f8   : > { %5864 = vmatpush3.msra.mxu0 %v5238_v51 }
 0x9f9   : > { %5865 = vmatprep.subr.mxu0 %v6142_v7 }
 0x9fa   : > { %5866 = vmatpush3.msra.mxu0 %v5237_v52 }
 0x9fb   : > { %5868 = vmatmul.mubr.msk.f32.vlgmr.msra.gmra.mxu0 %vm587_vm0, %v6792_v15  ;;  %5881 = vmatprep.subr.mxu0 %v6142_v7 }
 0x9fc   : > { %5882 = vmatpush3.msra.mxu0 %v5248_v53  ;;  %5889 = vmatprep.mubr.msk.f32.mxu0 %vm6143_vm1, %v6142_v7 }
 0x9fd   : > { %5883 = vmatprep.subr.mxu0 %v6142_v7 }
 0x9fe   : > { %5884 = vmatpush3.msra.mxu0 %v5247_v54 }
 0x9ff   : > { %5885 = vmatprep.subr.mxu0 %v6142_v7 }
 0xa00   : > { %5886 = vmatpush3.msra.mxu0 %v5246_v55 }
 0xa01   : > { %5887 = vmatprep.subr.mxu0 %v6142_v7 }
 0xa02   : > { %5888 = vmatpush3.msra.mxu0 %v5245_v56 }
 0xa03   : > { %5890 = vmatmul.mubr.msk.f32.vlgmr.msra.gmra.mxu0 %vm587_vm0, %v6792_v15  ;;  %5902 = vmatprep.subr.mxu0 %v6142_v7 }
 0xa04   : > { %5904 = vmatprep.mubr.msk.f32.mxu0 %vm6143_vm1, %v6142_v7 }
 0xa8c   : > { %v3003_v57 = vpop.f32.mrf.mxu0  ;;  %v3143_v58 = vpop.f32.mrf.mxu1 }
 0xa8d   : > { %v3004_v4 = vadd.f32 %v5261_v0, %v3003_v57  ;;  %v3144_v13 = vadd.f32 %v5263_v9, %v3143_v58 }
 0xa8e   : > { %v5770_v59 = vpop.f32.mrf.mxu0  ;;  %v5792_v60 = vpop.f32.mrf.mxu1 }
 0xa95   : > { %v3073_v62 = vpop.f32.mrf.mxu0 }
 0xa96   : > { %v3283_v63 = vpop.f32.mrf.mxu1  ;;  %v3074_v23 = vadd.f32 %v5262_v24, %v3073_v62 }
 0xa97   : > { %v3284_v1 = vadd.f32 %v5265_v61, %v3283_v63  ;;  %v5781_v2 = vpop.f32.mrf.mxu0 }
 0xa98   : > { %v5814_v3 = vpop.f32.mrf.mxu1 }
 0xa99   : > { %5893 = vmatpush3.xpose.msk.msra.mxu1 %vm1592_vm2, %v3284_v1 }
 0xa9a   : > { %5897 = vmatprep.subr.mxu1 %v6142_v7 }
 0xa9c   : > { %5895 = vmatmul.mubr.msk.f32.vlgmr.msra.gmra.mxu1 %vm1592_vm2, %v3004_v4 }
 0xa9d   : > { %5899 = vmatprep.mubr.msk.f32.mxu1 %vm6143_vm1, %v6142_v7 }
 0xa9f   : > { %v3213_v6 = vpop.f32.mrf.mxu0 }
 0xaa0   : > { %v3423_v8 = vpop.f32.mrf.mxu1  ;;  %v3214_v32 = vadd.f32 %v5264_v27, %v3213_v6  ;;  %v5272_v27 = vld [vmem:[%s7265_s5 + $0x17] ss:$0 sm:$0xff] }
 0xaa1   : > { %v3424_v10 = vadd.f32 %v5267_v5, %v3423_v8  ;;  %v5803_v11 = vpop.f32.mrf.mxu0 }
 0xaa2   : > { %v5836_v12 = vpop.f32.mrf.mxu1 }
 0xaa3   : > { %5903 = vmatpush3.xpose.msk.msra.mxu0 %vm1592_vm2, %v3424_v10 }
 0xaa4   : > { %5912 = vmatprep.subr.mxu0 %v6142_v7 }
 0xaa6   : > { %5905 = vmatmul.mubr.msk.f32.vlgmr.msra.gmra.mxu0 %vm1592_vm2, %v3144_v13 }
 0xaa7   : > { %5914 = vmatprep.mubr.msk.f32.mxu0 %vm6143_vm1, %v6142_v7 }
 0xaa9   : > { %v3353_v17 = vpop.f32.mrf.mxu0 }
 0xaaa   : > { %v3354_v18 = vadd.f32 %v5266_v14, %v3353_v17  ;;  %v3563_v19 = vpop.f32.mrf.mxu1 }
 0xaab   : > { %v3564_v20 = vadd.f32 %v5269_v16, %v3563_v19  ;;  %v5825_v21 = vpop.f32.mrf.mxu0 }
 0xaac   : > { %v5858_v22 = vpop.f32.mrf.mxu1  ;;  %5898 = vmatpush3.xpose.msk.msra.mxu1 %vm1592_vm2, %v3354_v18  ;;  %v5271_v18 = vld [vmem:[%s7265_s5 + $0x16] ss:$0 sm:$0xff] }
 0xaad   : > { %5913 = vmatpush3.msra.mxu0 %v3564_v20  ;;  %5907 = vmatprep.subr.mxu1 %v6142_v7 }
 0xaae   : > { %5922 = vmatprep.subr.mxu0 %v6142_v7 }
 0xaaf   : > { %5900 = vmatmul.mubr.msk.f32.vlgmr.msra.gmra.mxu1 %vm1592_vm2, %v3074_v23 }
 0xab0   : > { %5909 = vmatprep.mubr.msk.f32.mxu1 %vm6143_vm1, %v6142_v7 }
 0xab3   : > { %v3493_v26 = vpop.f32.mrf.mxu0 }
 0xab4   : > { %v3494_v28 = vadd.f32 %v5268_v25, %v3493_v26  ;;  %v7045_v29 = vpop.f32.mrf.mxu1 }
 0xab5   : > { %v5847_v30 = vpop.f32.mrf.mxu0  ;;  %v3704_v21 = vadd.f32 %v5271_v18, %v7045_v29  ;;  %v5325_v18 = vld [vmem:[%s7272_s12 + $0x78] sm:$0xff] }
 0xab6   : > { %v5880_v31 = vpop.f32.mrf.mxu1  ;;  %5908 = vmatpush3.xpose.msk.msra.mxu1 %vm1592_vm2, %v3494_v28 }
 0xab7   : > { %5917 = vmatprep.subr.mxu1 %v6142_v7 }
 0xab9   : > { %5910 = vmatmul.mubr.msk.f32.vlgmr.msra.gmra.mxu1 %vm1592_vm2, %v3214_v32 }
 0xaba   : > { %5919 = vmatprep.mubr.msk.f32.mxu1 %vm6143_vm1, %v6142_v7 }
 0xabb   : > { %v3633_v34 = vpop.f32.mrf.mxu0 }
 0xabc   : > { %v3634_v35 = vadd.f32 %v5270_v33, %v3633_v34  ;;  %v5297_v33 = vld [vmem:[%s7266_s6 + $0x20] sm:$0xff]  ;;  %v5298_v34 = vld [vmem:[%s7266_s6 + $0x28] sm:$0xff] }
 0xabd   : > { %v5869_v36 = vpop.f32.mrf.mxu0 }
 0xabe   : > { %5918 = vmatpush3.msra.mxu1 %v3634_v35  ;;  %v5299_v35 = vld [vmem:[%s7266_s6 + $0x30] sm:$0xff] }
 0xabf   : > { %5927 = vmatprep.subr.mxu1 %v6142_v7 }
 0xac3   : > { %v7056_v37 = vpop.f32.mrf.mxu0 }
 0xac4   : > { %v3774_v30 = vadd.f32 %v5272_v27, %v7056_v37  ;;  %v5316_v27 = vld [vmem:[%s7271_s11 + $0x1] ss:$0 sm:$0xff] }
 0xac5   : > { %v5891_v38 = vpop.f32.mrf.mxu0 }
 0xb5c   : > { %v3849_v39 = vpop.f32.mrf.mxu1 }
 0xb5d   : > { %v4081_v40 = vmul.f32 0.35355338, %v3849_v39 }
 0xb5e   : > { %v5896_v41 = vpop.f32.mrf.mxu1 }
 0xb5f   : > { %v4085_v42 = vadd.f32 %v6612_v47, %v4081_v40  ;;  %v5300_v40 = vld [vmem:[%s7266_s6 + $0x38] sm:$0xff] }
 0xb61   : > { %v4089_v43 = vsel %vm1592_vm2, %v4085_v42, -inf }
 0xb62   : > { %4090 = vmax.xlane.f32.xlu0 %v4089_v43 }
 0xb66   : > { %v4001_v44 = vpop.f32.mrf.mxu0 }
 0xb67   : > { %v4083_v45 = vmul.f32 0.35355338, %v4001_v44 }
 0xb68   : > { %v5906_v46 = vpop.f32.mrf.mxu0 }
 0xb69   : > { %v4087_v48 = vadd.f32 %v6612_v47, %v4083_v45 }
 0xb6b   : > { %v4095_v49 = vsel %vm1592_vm2, %v4087_v48, -inf }
 0xb6c   : > { %4096 = vmax.xlane.f32.xlu0 %v4095_v49 }
 0xb6f   : > { %v3925_v50 = vpop.f32.mrf.mxu1 }
 0xb70   : > { %v4082_v51 = vmul.f32 0.35355338, %v3925_v50 }
 0xb71   : > { %v5901_v52 = vpop.f32.mrf.mxu1 }
 0xb72   : > { %v4086_v53 = vadd.f32 %v6612_v47, %v4082_v51 }
 0xb74   : > { %v4092_v54 = vsel %vm1592_vm2, %v4086_v53, -inf }
 0xb75   : > { %4093 = vmax.xlane.f32.xlu1 %v4092_v54 }
 0xb79   : > { %v4077_v55 = vpop.f32.mrf.mxu1 }
 0xb7a   : > { %v4084_v56 = vmul.f32 0.35355338, %v4077_v55 }
 0xb7b   : > { %v5911_v57 = vpop.f32.mrf.mxu1 }
 0xb7c   : > { %v4088_v58 = vadd.f32 %v6612_v47, %v4084_v56 }
 0xb7e   : > { %v4098_v59 = vsel %vm1592_vm2, %v4088_v58, -inf }
 0xb7f   : > { %4099 = vmax.xlane.f32.xlu1 %v4098_v59  ;;  %v5306_v59 = vld [vmem:[%s7267_s7 + $0x1] ss:$0 sm:$0xff] }
 0xbeb   : > { %v4091_v60 = vpop.xlane.xlu0 %4090 }
 0xbec   : > { %v4101_v61 = vsub.f32 %v4085_v42, %v4091_v60 }
 0xbee   : > { %v4105_v62 = vmul.f32 1.442695, %v4101_v61 }
 0xbf0   : > { %6058 = vpow2.f32 %v4105_v62 }
 0xbf5   : > { %v4097_v63 = vpop.xlane.xlu0 %4096 }
 0xbf6   : > { %v4103_v0 = vsub.f32 %v4087_v48, %v4097_v63 }
 0xbf8   : > { %v4109_v1 = vmul.f32 1.442695, %v4103_v0 }
 0xbfa   : > { %6060 = vpow2.f32 %v4109_v1 }
 0xbfd   : > { %v6059_v2 = vpop.eup %6058 }
 0xbfe   : > { %v4094_v3 = vpop.xlane.xlu1 %4093  ;;  %v4113_v4 = vsel %vm1592_vm2, %v6059_v2, 0.0 }
 0xbff   : > { %v4102_v5 = vsub.f32 %v4086_v53, %v4094_v3  ;;  %4114 = vadd.xlane.f32.xlu0 %v4113_v4 }
 0xc01   : > { %v4107_v6 = vmul.f32 1.442695, %v4102_v5 }
 0xc03   : > { %6062 = vpow2.f32 %v4107_v6  ;;  %v5314_v6 = vld [vmem:[%s7270_s10 + $0x38] sm:$0xff] }
 0xc07   : > { %v6061_v47 = vpop.eup %6060 }
 0xc08   : > { %v4100_v8 = vpop.xlane.xlu1 %4099  ;;  %v4119_v9 = vsel %vm1592_vm2, %v6061_v47, 0.0 }
 0xc09   : > { %v4104_v10 = vsub.f32 %v4088_v58, %v4100_v8  ;;  %4120 = vadd.xlane.f32.xlu0 %v4119_v9  ;;  %v5311_v8 = vld [vmem:[%s7270_s10 + $0x20] sm:$0xff] }
 0xc0b   : > { %v4111_v11 = vmul.f32 1.442695, %v4104_v10 }
 0xc0d   : > { %6064 = vpow2.f32 %v4111_v11 }
 0xc10   : > { %v6063_v12 = vpop.eup %6062 }
 0xc11   : > { %v4116_v13 = vsel %vm1592_vm2, %v6063_v12, 0.0 }
 0xc12   : > { %4117 = vadd.xlane.f32.xlu1 %v4116_v13  ;;  %v5309_v13 = vld [vmem:[%s7268_s8 + $0x1] ss:$0 sm:$0xff] }
 0xc1a   : > { %v6065_v14 = vpop.eup %6064 }
 0xc1b   : > { %v4122_v16 = vsel %vm1592_vm2, %v6065_v14, 0.0 }
 0xc1c   : > { %4123 = vadd.xlane.f32.xlu1 %v4122_v16  ;;  %v5310_v16 = vld [vmem:[%s7269_s9 + $0x1] ss:$0 sm:$0xff] }
 0xc88   : > { %v4115_v17 = vpop.xlane.xlu0 %4114 }
 0xc89   : > { %6066 = vrcp.f32 %v4115_v17 }
 0xc92   : > { %v4121_v24 = vpop.xlane.xlu0 %4120 }
 0xc93   : > { %6068 = vrcp.f32 %v4121_v24 }
 0xc96   : > { %v6067_v19 = vpop.eup %6066 }
 0xc97   : > { %v4129_v20 = vmul.f32 %v6067_v19, %v6059_v2  ;;  %v5324_v19 = vld [vmem:[%s7272_s12 + $0x70] sm:$0xff] }
 0xc99   : > { %5915 = vmatmul.mubr.msk.f32.vlgmr.msra.gmra.mxu0 %vm1592_vm2, %v4129_v20  ;;  %v5323_v20 = vld [vmem:[%s7272_s12 + $0x68] sm:$0xff] }
 0xc9a   : > { %5923 = vmatpush3.msra.mxu0 %v3704_v21  ;;  %5924 = vmatprep.mubr.msk.f32.mxu0 %vm6143_vm1, %v6142_v7  ;;  %v5322_v21 = vld [vmem:[%s7272_s12 + $0x60] sm:$0xff] }
 0xc9b   : > { %v4118_v22 = vpop.xlane.xlu1 %4117  ;;  %5932 = vmatprep.subr.mxu0 %v6142_v7 }
 0xc9c   : > { %6070 = vrcp.f32 %v4118_v22  ;;  %v5321_v22 = vld [vmem:[%s7272_s12 + $0x58] sm:$0xff] }
 0xca0   : > { %v6069_v23 = vpop.eup %6068 }
 0xca1   : > { %v4131_v25 = vmul.f32 %v6069_v23, %v6061_v47  ;;  %v5313_v47 = vld [vmem:[%s7270_s10 + $0x30] sm:$0xff] }
 0xca2   : > { %v5320_v23 = vld [vmem:[%s7272_s12 + $0x50] sm:$0xff] }
 0xca3   : > { %5925 = vmatmul.mubr.msk.f32.vlgmr.msra.gmra.mxu0 %vm1592_vm2, %v4131_v25  ;;  %v5319_v25 = vld [vmem:[%s7272_s12 + $0x48] sm:$0xff] }
 0xca4   : > { %5934 = vmatprep.mubr.msk.f32.mxu0 %vm6143_vm1, %v6142_v7  ;;  %5933 = vmatpush3.msra.mxu0 %v5297_v33 }
 0xca5   : > { %v4124_v26 = vpop.xlane.xlu1 %4123  ;;  %5942 = vmatprep.subr.mxu0 %v6142_v7 }
 0xca6   : > { %6072 = vrcp.f32 %v4124_v26  ;;  %v5318_v26 = vld [vmem:[%s7272_s12 + $0x40] sm:$0xff] }
 0xca9   : > { %v6071_v28 = vpop.eup %6070 }
 0xcaa   : > { %v4130_v29 = vmul.f32 %v6071_v28, %v6063_v12 }
 0xcac   : > { %5920 = vmatmul.mubr.msk.f32.vlgmr.msra.gmra.mxu1 %vm1592_vm2, %v4130_v29 }
 0xcad   : > { %5928 = vmatpush3.msra.mxu1 %v3774_v30  ;;  %5929 = vmatprep.mubr.msk.f32.mxu1 %vm6143_vm1, %v6142_v7 }
 0xcae   : > { %5937 = vmatprep.subr.mxu1 %v6142_v7 }
 0xcb3   : > { %v6073_v31 = vpop.eup %6072 }
 0xcb4   : > { %v4132_v32 = vmul.f32 %v6073_v31, %v6065_v14 }
 0xcb6   : > { %5930 = vmatmul.mubr.msk.f32.vlgmr.msra.gmra.mxu1 %vm1592_vm2, %v4132_v32 }
 0xcb7   : > { %5939 = vmatprep.mubr.msk.f32.mxu1 %vm6143_vm1, %v6142_v7  ;;  %5938 = vmatpush3.msra.mxu1 %v5298_v34 }
 0xcb8   : > { %5947 = vmatprep.subr.mxu1 %v6142_v7 }
 0xd59   : > { %v4202_v36 = vpop.f32.mrf.mxu0 }
 0xd5a   : > { %5935 = vmatmul.mubr.msk.f32.vlgmr.msra.gmra.mxu0 %vm1592_vm2, %v4202_v36 }
 0xd5b   : > { %v5916_v37 = vpop.f32.mrf.mxu0  ;;  %5943 = vmatpush3.msra.mxu0 %v5299_v35  ;;  %5944 = vmatprep.mubr.msk.f32.mxu0 %vm6143_vm1, %v6142_v7 }
 0xd5c   : > { %5952 = vmatprep.subr.mxu0 %v6142_v7 }
 0xd63   : > { %v4348_v38 = vpop.f32.mrf.mxu0 }
 0xd64   : > { %5945 = vmatmul.mubr.msk.f32.vlgmr.msra.gmra.mxu0 %vm1592_vm2, %v4348_v38 }
 0xd65   : > { %v5926_v39 = vpop.f32.mrf.mxu0  ;;  %5960 = vmatprep.mubr.msk.f32.mxu0 %vm6143_vm1, %v6142_v7  ;;  %5953 = vmatpush3.msra.mxu0 %v5314_v6 }
 0xd66   : > { %5954 = vmatprep.subr.mxu0 %v6142_v7 }
 0xd67   : > { %5955 = vmatpush3.msra.mxu0 %v5313_v47 }
 0xd68   : > { %5956 = vmatprep.subr.mxu0 %v6142_v7 }
 0xd6c   : > { %v4275_v41 = vpop.f32.mrf.mxu1 }
 0xd6d   : > { %5940 = vmatmul.mubr.msk.f32.vlgmr.msra.gmra.mxu1 %vm1592_vm2, %v4275_v41 }
 0xd6e   : > { %v5921_v42 = vpop.f32.mrf.mxu1  ;;  %5948 = vmatpush3.msra.mxu1 %v5300_v40  ;;  %5949 = vmatprep.mubr.msk.f32.mxu1 %vm6143_vm1, %v6142_v7  ;;  %v5327_v40 = vld [vmem:[%s7273_s13 + $0x1] ss:$0 sm:$0xff] }
 0xd6f   : > { %5963 = vmatprep.subr.mxu1 %v6142_v7 }
 0xd76   : > { %v4421_v43 = vpop.f32.mrf.mxu1 }
 0xd77   : > { %5950 = vmatmul.mubr.msk.f32.vlgmr.msra.gmra.mxu1 %vm1592_vm2, %v4421_v43 }
 0xd78   : > { %v5931_v44 = vpop.f32.mrf.mxu1  ;;  %5979 = vmatprep.mubr.msk.f32.mxu1 %vm6143_vm1, %v6142_v7  ;;  %5964 = vmatpush3.msra.mxu1 %v5325_v18 }
 0xd79   : > { %5965 = vmatprep.subr.mxu1 %v6142_v7 }
 0xd7a   : > { %5966 = vmatpush3.msra.mxu1 %v5324_v19 }
 0xd7b   : > { %5967 = vmatprep.subr.mxu1 %v6142_v7 }
 0xd7c   : > { %5968 = vmatpush3.msra.mxu1 %v5323_v20 }
 0xd7d   : > { %5969 = vmatprep.subr.mxu1 %v6142_v7 }
 0xd7e   : > { %5970 = vmatpush3.msra.mxu1 %v5322_v21 }
 0xd7f   : > { %5971 = vmatprep.subr.mxu1 %v6142_v7 }
 0xd80   : > { %5972 = vmatpush3.msra.mxu1 %v5321_v22 }
 0xd81   : > { %5973 = vmatprep.subr.mxu1 %v6142_v7 }
 0xd82   : > { %5974 = vmatpush3.msra.mxu1 %v5320_v23 }
 0xd83   : > { %5975 = vmatprep.subr.mxu1 %v6142_v7 }
 0xd84   : > { %5976 = vmatpush3.msra.mxu1 %v5319_v25 }
 0xd85   : > { %5977 = vmatprep.subr.mxu1 %v6142_v7 }
 0xd86   : > { %5978 = vmatpush3.msra.mxu1 %v5318_v26 }
 0xe1a   : > { %v4499_v45 = vpop.f32.mrf.mxu0 }
 0xe1b   : > { %v4722_v53 = vsel %vm587_vm0, %v4499_v45, 0.0 }
 0xe1c   : > { %v5936_v46 = vpop.f32.mrf.mxu0 }
 0xe24   : > { %v4645_v48 = vpop.f32.mrf.mxu0 }
 0xe25   : > { %v4725_v55 = vsel %vm587_vm0, %v4645_v48, 0.0 }
 0xe26   : > { %v5946_v49 = vpop.f32.mrf.mxu0 }
 0xe2d   : > { %v4572_v50 = vpop.f32.mrf.mxu1 }
 0xe2e   : > { %v4723_v52 = vsel %vm587_vm0, %v4572_v50, 0.0 }
 0xe2f   : > { %v5941_v51 = vpop.f32.mrf.mxu1  ;;  %v4724_v54 = vadd.f32 %v4723_v52, %v4722_v53  ;;  %v4990_v52 = vld [vmem:[%s7276_s16 + $0x18] sm:$0xff]  ;;  %v4989_v53 = vld [vmem:[%s7276_s16 + $0x10] sm:$0xff] }
 0xe31   : > { %v4726_v57 = vadd.f32 %v4725_v55, %v4724_v54  ;;  %v4988_v54 = vld [vmem:[%s7276_s16 + $0x8] sm:$0xff]  ;;  %v4987_v55 = vld [vmem:[%s7276_s16] sm:$0xff] }
 0xe37   : > { %v4718_v56 = vpop.f32.mrf.mxu1 }
 0xe38   : > { %v4727_v58 = vsel %vm587_vm0, %v4718_v56, 0.0 }
 0xe39   : > { %v4728_v60 = vadd.f32 %v4727_v58, %v4726_v57  ;;  %v5951_v61 = vpop.f32.mrf.mxu1 }
 0xe3b   : > { %v4737_v62 = vadd.f32 %v5306_v59, %v4728_v60  ;;  %v5331_v60 = vld [vmem:[%s7274_s14 + $0x1] ss:$0 sm:$0xff] }
 0xe3d   : > { %v4738_v63 = vadd.f32 %v4737_v62, %v6792_v15  ;;  %v5312_v15 = vld [vmem:[%s7270_s10 + $0x28] sm:$0xff]  ;;  %v5332_v62 = vld [vmem:[%s7275_s15 + $0x1] ss:$0 sm:$0xff] }
 0xe3e   : > { %5957 = vmatpush3.msra.mxu0 %v5312_v15 }
 0xe3f   : > { %v4743_v0 = vsel %vm587_vm0, %v4738_v63, 0.0  ;;  %5958 = vmatprep.subr.mxu0 %v6142_v7 }
 0xe40   : > { %4744 = vadd.xlane.f32.xlu0 %v4743_v0  ;;  %5959 = vmatpush3.msra.mxu0 %v5311_v8 }
 0xe41   : > { %5982 = vmatprep.subr.mxu0 %v6142_v7 }
 0xec9   : > { %v4745_v1 = vpop.xlane.xlu0 %4744 }
 0xeca   : > { %v4746_v2 = vmul.f32 0.03125, %v4745_v1 }
 0xecc   : > { %v4747_v3 = vsub.f32 %v4738_v63, %v4746_v2 }
 0xece   : > { %v4748_v4 = vmul.f32 %v4747_v3, %v4747_v3 }
 0xed0   : > { %v4749_v5 = vsel %vm587_vm0, %v4748_v4, 0.0 }
 0xed1   : > { %4750 = vadd.xlane.f32.xlu1 %v4749_v5 }
 0xf5a   : > { %v4751_v9 = vpop.xlane.xlu1 %4750 }
 0xf5b   : > { %v4752_v10 = vmul.f32 0.03125, %v4751_v9 }
 0xf5d   : > { %v4753_v11 = vadd.f32 1e-12, %v4752_v10 }
 0xf5f   : > { %6074 = vrsqrt.f32 %v4753_v11 }
 0xf6c   : > { %v6075_v12 = vpop.eup %6074 }
 0xf6d   : > { %v4755_v14 = vmul.f32 %v6075_v12, %v4747_v3 }
 0xf6f   : > { %v4762_v17 = vmul.f32 %v5309_v13, %v4755_v14 }
 0xf71   : > { %v4769_v24 = vadd.f32 %v5310_v16, %v4762_v17 }
 0xf73   : > { %5961 = vmatmul.mubr.msk.f32.vlgmr.msra.gmra.mxu0 %vm587_vm0, %v4769_v24 }
 0xf74   : > { %5990 = vmatprep.mubr.msk.f32.mxu0 %vm6143_vm1, %v6142_v7  ;;  %5983 = vmatpush3.msra.mxu0 %v4990_v52 }
 0xf75   : > { %5984 = vmatprep.subr.mxu0 %v6142_v7 }
 0xf76   : > { %5985 = vmatpush3.msra.mxu0 %v4989_v53 }
 0xf77   : > { %5986 = vmatprep.subr.mxu0 %v6142_v7 }
 0xf78   : > { %5987 = vmatpush3.msra.mxu0 %v4988_v54 }
 0xf79   : > { %5988 = vmatprep.subr.mxu0 %v6142_v7  ;;  %v4991_v7 = vld [vmem:[%s7277_s17] sm:$0x1] }
 0xf7a   : > { %5989 = vmatpush3.msra.mxu0 %v4987_v55 }
0x1033   : > { %v4852_v28 = vpop.f32.mrf.mxu0 }
0x1034   : > { %v4853_v29 = vadd.f32 %v5316_v27, %v4852_v28 }
0x1035   : > { %v5962_v30 = vpop.f32.mrf.mxu0 }
0x1036   : > { %v4857_v31 = vmul.f32 0.044715, %v4853_v29  ;;  %v4856_v37 = vmul.f32 0.5, %v4853_v29 }
0x1038   : > { %v4858_v32 = vmul.f32 %v4857_v31, %v4853_v29 }
0x103a   : > { %v4859_v33 = vmul.f32 %v4858_v32, %v4853_v29 }
0x103c   : > { %v4860_v34 = vadd.f32 %v4859_v33, %v4853_v29 }
0x103e   : > { %v4861_v35 = vmul.f32 0.7978846, %v4860_v34 }
0x1040   : > { %6076 = vtanh.f32 %v4861_v35 }
0x104d   : > { %v6077_v36 = vpop.eup %6076 }
0x104e   : > { %v4863_v38 = vadd.f32 1.0, %v6077_v36 }
0x1050   : > { %v4864_v39 = vmul.f32 %v4863_v38, %v4856_v37 }
0x1052   : > { %5980 = vmatmul.mubr.msk.f32.vlgmr.msra.gmra.mxu1 %vm2696_vm3, %v4864_v39 }
0x1112   : > { %v4951_v41 = vpop.f32.mrf.mxu1 }
0x1113   : > { %v4952_v42 = vadd.f32 %v5327_v40, %v4951_v41 }
0x1114   : > { %v5981_v43 = vpop.f32.mrf.mxu1 }
0x1115   : > { %v4955_v44 = vadd.f32 %v4952_v42, %v4769_v24 }
0x1117   : > { %v4960_v45 = vsel %vm587_vm0, %v4955_v44, 0.0 }
0x1118   : > { %4961 = vadd.xlane.f32.xlu0 %v4960_v45 }
0x11a1   : > { %v4962_v46 = vpop.xlane.xlu0 %4961 }
0x11a2   : > { %v4963_v48 = vmul.f32 0.03125, %v4962_v46 }
0x11a4   : > { %v4964_v49 = vsub.f32 %v4955_v44, %v4963_v48 }
0x11a6   : > { %v4965_v50 = vmul.f32 %v4964_v49, %v4964_v49 }
0x11a8   : > { %v4966_v51 = vsel %vm587_vm0, %v4965_v50, 0.0 }
0x11a9   : > { %4967 = vadd.xlane.f32.xlu1 %v4966_v51 }
0x1232   : > { %v4968_v56 = vpop.xlane.xlu1 %4967 }
0x1233   : > { %v4969_v57 = vmul.f32 0.03125, %v4968_v56 }
0x1235   : > { %v4970_v58 = vadd.f32 1e-12, %v4969_v57 }
0x1237   : > { %6078 = vrsqrt.f32 %v4970_v58 }
0x1244   : > { %v6079_v59 = vpop.eup %6078 }
0x1245   : > { %v4972_v61 = vmul.f32 %v6079_v59, %v4964_v49 }
0x1247   : > { %v4979_v63 = vmul.f32 %v5331_v60, %v4972_v61 }
0x1249   : > { %v4986_v0 = vadd.f32 %v5332_v62, %v4979_v63 }
0x124b   : > { %5991 = vmatmul.mubr.msk.f32.vlgmr.msra.gmra.mxu0 %vm587_vm0, %v4986_v0 }
0x130b   : > { %v5061_v1 = vpop.f32.mrf.mxu0 }
0x130c   : > { %v5062_v2 = vadd.f32 %v5061_v1, %v4991_v7 }
0x130d   : > { %v5992_v3 = vpop.f32.mrf.mxu0 }
0x130e   : > { %5066 = vst.msk [vmem:[%s576_s21] sm:$0x1] %vm5065_vm4, %v5062_v2 }
0x130f   : > { %6093 = shalt.err (!%p6090_p3)
}
0x1310   : > { %s6094_s20 = scalar_lea.hbm %s7225_s25, 16  ;;  %s6098_s24 = scalar_lea.hbm %s7278_s18, 32 }
0x1311   : > { %p6095_p4 = scmp.ne.s32.totalorder %s7225_s25, %s6094_s20  ;;  %p6099_p9 = scmp.lt.s32.totalorder %s7225_s25, %s7278_s18 }
0x1312   : > { %p6100_p10 = scmp.lt.s32.totalorder %s6098_s24, %s6094_s20 }
0x1313   : > { %p6096_p7 = pnand %p6095_p4, %p6278_p5 }
0x1314   : > { %p6101_p11 = por %p6100_p10, %p6099_p9 }
0x1315   : > { %p6097_p8 = pneg %p6096_p7 }
0x1317   : > { %p6102_p12 = pnand %p6101_p11, %p6097_p8 }
0x1319   : > { %6105 = shalt.err (!%p6102_p12)
}
0x131a   : > { %5993 = dma.vmem_to_hbm [thread:$0]  (%p6278_p5), %s5081_s29, 16, %s7225_s25, %s5068_s26  }
0x131b PF: > { %p5999_p13 = scmp.ge.s32.totalorder %s6140_s30, 2  ;;  %s5092_s1 = sand.u32 1, %s6128_s27  }
0x131c   : > { %s5093_s19 = scalar_lea.sflag [#allocation3], %s5092_s1 }
0x131d   : > { %p5996_p0 = pnand %p5999_p13, %p6282_p6 }
0x131f   : > { %p5997_p1 = pneg %p5996_p0 }
0x1321   : > { %6123 = dma.done.wait (%p5997_p1), %s5093_s19, 16  }
0x1322   : > { %6125 = vsyncadd (%p5997_p1), %s5093_s19, 4294967280  ;;  %s7298_s30 = sld [smem:[#allocation6_spill]]  ;;  %s7301_s27 = smov %s6132_s28 }
0x1323   : > { %s7299_s20 = sld [smem:[#allocation5_spill]] }
0x1324   : > { %s7300_s29 = sld [smem:[#allocation7_spill]] }
0x1328   : > { %p28_p2 = scmp.ge.s32.totalorder %s7298_s30, 4  }
0x1329   : > { %s7302_s28 = smov %s7299_s20 }
0x132a   :  { %30 = sbr.rel (!%p28_p2) target bundleno = 8 (0x8), region = 142 }
0x132f   :  { %5097 = vsyncpa [#allocation3], 1 }
0x1330   :  { %5099 = vsyncpa [#allocation3 + $0x1], 1 }

</bundles_post_ra>
